<compile_context>
chip_gen: v5e
topology: v5e:2x2
jax: 0.10.0
libtpu: 0.0.40
codegen_flags: <defaults>
</compile_context>

<pallas_src>
import functools

import jax
import jax.numpy as jnp
from jax.experimental import pallas as pl
from jax.experimental.pallas import tpu as pltpu

LRELU_SLOPE = 0.1   # construct_linear uses nn.LeakyReLU(0.1)
LN_EPS = 1e-5       # nn.LayerNorm default eps


def _round_up(n, m):
    return ((n + m - 1) // m) * m


# ---------------------------------------------------------------------------
# Fused kernel (everything in one pallas_call)
# ---------------------------------------------------------------------------
def _make_fused_kernel(obs_dim, hidden_dims, encoded_dims, act_half):
    n_l = len(hidden_dims)
    n_e = len(encoded_dims)

    def kernel(*refs):
        it = iter(refs)
        x_ref = next(it)
        lw = [next(it) for _ in range(n_l)]          # left trunk weights
        lmw = next(it)                               # left mean head weight
        ew = [next(it) for _ in range(n_e)]          # encoder weights
        rw0_obs = next(it)                           # right trunk layer0, obs part
        rw0_enc = next(it)                           # right trunk layer0, encoded part
        rw_rest = [next(it) for _ in range(n_l - 1)] # right trunk remaining weights
        rmw = next(it)                               # right mean head weight
        vecs_ref = next(it)                          # packed biases/gammas/betas
        mean_ref = next(it)                          # out: (B, action_dim)
        feat_ref = next(it)                          # out: (B, hidden[-1])  (right features)

        # Packed vector rows are consumed sequentially (same order as packing).
        row = [0]

        def take(d):
            r = row[0]
            row[0] += 1
            return vecs_ref[r:r + 1, :d]             # (1, d), static slice

        def matmul(h, w):
            # (B, K) @ (K, N). K == 1 is a pure broadcast -> VPU, skip the MXU.
            if w.shape[0] == 1:
                return h * w
            return jnp.dot(h, w, preferred_element_type=jnp.float32)

        def lin_ln_lrelu(z, d):
            # z = h @ W (bias not yet added); consumes rows b, gamma, beta.
            b, g, beta = take(d), take(d), take(d)
            y = z + b
            # one-pass LayerNorm statistics (biased variance, like torch LN)
            s1 = jnp.sum(y, axis=-1, keepdims=True)
            s2 = jnp.sum(y * y, axis=-1, keepdims=True)
            mu = s1 * (1.0 / d)
            var = s2 * (1.0 / d) - mu * mu
            yn = (y - mu) * jax.lax.rsqrt(var + LN_EPS)
            yn = yn * g + beta
            return jnp.where(yn >= 0, yn, LRELU_SLOPE * yn)

        x = x_ref[...]                 # (B, obs_dim + latent_dim)
        obs = x[:, :obs_dim]           # lane slice of a live value

        # ---- left GaitPolicy trunk + mean head --------------------------------
        h = x
        for i, d in enumerate(hidden_dims):
            h = lin_ln_lrelu(matmul(h, lw[i][...]), d)
        left_feat = h
        left_mean = matmul(left_feat, lmw[...]) + take(act_half)

        # ---- encoder over the left high-level features ------------------------
        e = left_feat
        for i, d in enumerate(encoded_dims):
            e = lin_ln_lrelu(matmul(e, ew[i][...]), d)

        # ---- right GaitPolicy on cat(obs, encoded) -----------------------------
        # cat + first Linear is done as a split matmul: obs @ W0a + enc @ W0b.
        h = lin_ln_lrelu(matmul(obs, rw0_obs[...]) + matmul(e, rw0_enc[...]),
                         hidden_dims[0])
        for i, d in enumerate(hidden_dims[1:]):
            h = lin_ln_lrelu(matmul(h, rw_rest[i][...]), d)
        right_feat = h
        right_mean = matmul(right_feat, rmw[...]) + take(act_half)

        # mean = cat(left_mean, right_mean) written straight into one output row.
        mean_ref[:, :act_half] = left_mean
        mean_ref[:, act_half:] = right_mean
        feat_ref[...] = right_feat

    return kernel


def _fused_pallas_call(packed, xb, *, obs_dim, hidden_dims, encoded_dims,
                       act_half, batch_block):
    weights = packed["weights"]
    vecs = packed["vecs"]
    b_total, din = xb.shape
    grid = (b_total // batch_block,)
    h_last = hidden_dims[-1]
    action_dim = 2 * act_half

    kernel = _make_fused_kernel(obs_dim, hidden_dims, encoded_dims, act_half)

    in_specs = [pl.BlockSpec((batch_block, din), lambda i: (i, 0))]
    in_specs += [pl.BlockSpec(w.shape, lambda i: (0, 0)) for w in weights]  # resident
    in_specs += [pl.BlockSpec(vecs.shape, lambda i: (0, 0))]
    out_specs = (pl.BlockSpec((batch_block, action_dim), lambda i: (i, 0)),
                 pl.BlockSpec((batch_block, h_last), lambda i: (i, 0)))
    out_shape = (jax.ShapeDtypeStruct((b_total, action_dim), jnp.float32),
                 jax.ShapeDtypeStruct((b_total, h_last), jnp.float32))

    mean, feat = pl.pallas_call(
        kernel,
        grid=grid,
        in_specs=in_specs,
        out_specs=out_specs,
        out_shape=out_shape,
        compiler_params=pltpu.CompilerParams(
            dimension_semantics=("parallel",)),   # batch axis -> megacore on v7x
    )(xb, *weights, vecs)
    return mean, feat


# ---------------------------------------------------------------------------
# Deterministic parameter construction (synthetic, PyTorch-default-style init)
# ---------------------------------------------------------------------------
def init_linear(key, din, dout):
    kw, kb = jax.random.split(key)
    bound = 1.0 / (din ** 0.5)
    w = jax.random.uniform(kw, (din, dout), jnp.float32, -bound, bound)
    b = jax.random.uniform(kb, (1, dout), jnp.float32, -bound, bound)
    return w, b


def init_mlp(key, din, dims):
    """construct_linear equivalent: list of (W, b, gamma, beta) per layer."""
    layers = []
    last = din
    for d in dims:
        key, sub = jax.random.split(key)
        w, b = init_linear(sub, last, d)
        layers.append((w, b, jnp.ones((1, d), jnp.float32), jnp.zeros((1, d), jnp.float32)))
        last = d
    return layers, key


def init_gait_policy(key, obs_dim, latent_dim, action_dim, hidden_dims):
    trunk, key = init_mlp(key, obs_dim + latent_dim, hidden_dims)
    key, sub = jax.random.split(key)
    wm, bm = init_linear(sub, hidden_dims[-1], action_dim)
    log_std = jnp.zeros((action_dim,), jnp.float32)
    return {"trunk": trunk, "mean_w": wm, "mean_b": bm, "log_std": log_std}, key


def init_encode_policy(key, obs_dim, latent_dim, action_dim, hidden_dims, encoded_dims):
    left, key = init_gait_policy(key, obs_dim, latent_dim, action_dim // 2, hidden_dims)
    right, key = init_gait_policy(key, obs_dim, encoded_dims[-1], action_dim // 2, hidden_dims)
    encoder, key = init_mlp(key, hidden_dims[-1], encoded_dims)
    return {"left": left, "right": right, "encoder": encoder}


def pack_encode_policy(params, obs_dim):
    """One-time packing: weight list (kernel order) + one packed vector table."""
    weights = []
    vec_rows = []

    def add_block(layers):
        for (w, b, g, beta) in layers:
            weights.append(w)
            vec_rows.extend([b, g, beta])

    add_block(params["left"]["trunk"])
    weights.append(params["left"]["mean_w"])
    vec_rows.append(params["left"]["mean_b"])
    add_block(params["encoder"])

    rt = params["right"]["trunk"]
    w0, b0, g0, beta0 = rt[0]
    weights.append(w0[:obs_dim, :])       # obs part of right-trunk layer 0
    weights.append(w0[obs_dim:, :])       # encoded part of right-trunk layer 0
    vec_rows.extend([b0, g0, beta0])
    for (w, b, g, beta) in rt[1:]:
        weights.append(w)
        vec_rows.extend([b, g, beta])
    weights.append(params["right"]["mean_w"])
    vec_rows.append(params["right"]["mean_b"])

    dmax = max(v.shape[1] for v in vec_rows)
    vecs = jnp.concatenate(
        [jnp.pad(v, ((0, 0), (0, dmax - v.shape[1]))) for v in vec_rows], axis=0)
    log_std = jnp.concatenate([params["left"]["log_std"], params["right"]["log_std"]])
    return {"weights": tuple(weights), "vecs": vecs, "log_std": log_std}


# ---------------------------------------------------------------------------
# Forward passes
# ---------------------------------------------------------------------------
def encode_policy_apply(packed, xb, *, obs_dim, latent_dim, hidden_dims,
                        encoded_dims, action_dim):
    """Batched forward: xb is (B, obs_dim + latent_dim)."""
    assert xb.shape[1] == obs_dim + latent_dim
    act_half = action_dim // 2
    b = xb.shape[0]
    # batch block: pad to a sublane multiple of 8, cap at 128 rows per grid step
    bb = 128 if b >= 128 else _round_up(max(b, 8), 8)
    bp = _round_up(b, bb)
    if bp != b:
        xb = jnp.pad(xb, ((0, bp - b), (0, 0)))
    mean, feat = _fused_pallas_call(packed, xb, obs_dim=obs_dim,
                                    hidden_dims=hidden_dims,
                                    encoded_dims=encoded_dims,
                                    act_half=act_half, batch_block=bb)
    std = jnp.exp(packed["log_std"])      # learned constant, independent of x
    return mean[:b], std, feat[:b]


def encode_policy_forward(packed, x, **cfg):
    """Module-equivalent single-sample forward: x is (obs_dim + latent_dim,)."""
    mean, std, feat = encode_policy_apply(packed, x[None, :], **cfg)
    return mean[0], std, feat[0]


# ---------------------------------------------------------------------------
# Pure-JAX reference (for correctness checking only)
# ---------------------------------------------------------------------------
def _ref_mlp(layers, h):
    hp = jax.lax.Precision.HIGHEST
    for (w, b, g, beta) in layers:
        y = jnp.dot(h, w, precision=hp) + b
        mu = jnp.mean(y, axis=-1, keepdims=True)
        var = jnp.mean((y - mu) ** 2, axis=-1, keepdims=True)
        yn = (y - mu) / jnp.sqrt(var + LN_EPS) * g + beta
        h = jnp.where(yn >= 0, yn, LRELU_SLOPE * yn)
    return h


def encode_policy_reference(params, xb, obs_dim):
    hp = jax.lax.Precision.HIGHEST
    obs = xb[:, :obs_dim]
    lh = _ref_mlp(params["left"]["trunk"], xb)
    left_mean = jnp.dot(lh, params["left"]["mean_w"], precision=hp) + params["left"]["mean_b"]
    enc = _ref_mlp(params["encoder"], lh)
    rin = jnp.concatenate([obs, enc], axis=-1)
    rh = _ref_mlp(params["right"]["trunk"], rin)
    right_mean = jnp.dot(rh, params["right"]["mean_w"], precision=hp) + params["right"]["mean_b"]
    mean = jnp.concatenate([left_mean, right_mean], axis=-1)
    std = jnp.exp(jnp.concatenate([params["left"]["log_std"], params["right"]["log_std"]]))
    return mean, std, rh


if __name__ == "__main__":
    # Small shapes consistent with the module's structure.
    OBS_DIM, LATENT_DIM, ACTION_DIM = 24, 8, 8
    HIDDEN_DIMS = (32, 32, 32)
    ENCODED_DIMS = (16, 8, 1)     # keep the 1-dim "high-level feature encoding"
    B = 8

    key = jax.random.PRNGKey(0)
    key, pkey, xkey = jax.random.split(key, 3)
    params = init_encode_policy(pkey, OBS_DIM, LATENT_DIM, ACTION_DIM,
                                HIDDEN_DIMS, ENCODED_DIMS)
    packed = pack_encode_policy(params, OBS_DIM)

    xb = jax.random.normal(xkey, (B, OBS_DIM + LATENT_DIM), jnp.float32)

    cfg = dict(obs_dim=OBS_DIM, latent_dim=LATENT_DIM, hidden_dims=HIDDEN_DIMS,
               encoded_dims=ENCODED_DIMS, action_dim=ACTION_DIM)

    # Batched fused forward (single pallas_call).
    fwd_batched = jax.jit(functools.partial(encode_policy_apply, **cfg))
    mean, std, feat = fwd_batched(packed, xb)
    jax.block_until_ready((mean, std, feat))

    # Module-equivalent single-vector forward (same fused kernel, batch padded to 8).
    fwd_single = jax.jit(functools.partial(encode_policy_forward, **cfg))
    mean1, std1, feat1 = fwd_single(packed, xb[0])
    jax.block_until_ready((mean1, std1, feat1))

    # Shape / sanity checks.
    assert mean.shape == (B, ACTION_DIM)
    assert std.shape == (ACTION_DIM,)
    assert feat.shape == (B, HIDDEN_DIMS[-1])
    assert mean1.shape == (ACTION_DIM,) and feat1.shape == (HIDDEN_DIMS[-1],)
    assert jnp.all(jnp.isfinite(mean)) and jnp.all(jnp.isfinite(std)) and jnp.all(jnp.isfinite(feat))

    # Numerical check against the pure-JAX reference of the same module.
    ref_mean, ref_std, ref_feat = encode_policy_reference(params, xb, OBS_DIM)
    assert jnp.allclose(mean, ref_mean, atol=5e-3, rtol=5e-3)
    assert jnp.allclose(feat, ref_feat, atol=5e-3, rtol=5e-3)
    assert jnp.allclose(std, ref_std, atol=1e-6, rtol=1e-6)
    assert jnp.allclose(mean1, ref_mean[0], atol=5e-3, rtol=5e-3)

    print("KERNEL_OK")
</pallas_src>

<mosaic_0001>
module attributes {stable_mosaic.version = 11 : i64} {
  func.func @kernel(%arg0: i32, %arg1: memref<8x32xf32, #tpu.memory_space<vmem>>, %arg2: memref<32x32xf32, #tpu.memory_space<vmem>>, %arg3: memref<32x32xf32, #tpu.memory_space<vmem>>, %arg4: memref<32x32xf32, #tpu.memory_space<vmem>>, %arg5: memref<32x4xf32, #tpu.memory_space<vmem>>, %arg6: memref<32x16xf32, #tpu.memory_space<vmem>>, %arg7: memref<16x8xf32, #tpu.memory_space<vmem>>, %arg8: memref<8x1xf32, #tpu.memory_space<vmem>>, %arg9: memref<24x32xf32, #tpu.memory_space<vmem>>, %arg10: memref<1x32xf32, #tpu.memory_space<vmem>>, %arg11: memref<32x32xf32, #tpu.memory_space<vmem>>, %arg12: memref<32x32xf32, #tpu.memory_space<vmem>>, %arg13: memref<32x4xf32, #tpu.memory_space<vmem>>, %arg14: memref<29x32xf32, #tpu.memory_space<vmem>>, %arg15: memref<8x8xf32, #tpu.memory_space<vmem>>, %arg16: memref<8x32xf32, #tpu.memory_space<vmem>>) attributes {dimension_semantics = [#tpu.dimension_semantics<parallel>], iteration_bounds = array<i64: 1>, scalar_prefetch = 0 : i64, scratch_operands = 0 : i64, tpu.core_type = #tpu.core_type<tc>, window_params = [{transform_indices = @transform_0, window_bounds = array<i64: 8, 32>}, {pipeline_mode = #tpu.pipeline_mode<synchronous>, transform_indices = @transform_1, window_bounds = array<i64: 32, 32>}, {pipeline_mode = #tpu.pipeline_mode<synchronous>, transform_indices = @transform_2, window_bounds = array<i64: 32, 32>}, {pipeline_mode = #tpu.pipeline_mode<synchronous>, transform_indices = @transform_3, window_bounds = array<i64: 32, 32>}, {pipeline_mode = #tpu.pipeline_mode<synchronous>, transform_indices = @transform_4, window_bounds = array<i64: 32, 4>}, {pipeline_mode = #tpu.pipeline_mode<synchronous>, transform_indices = @transform_5, window_bounds = array<i64: 32, 16>}, {pipeline_mode = #tpu.pipeline_mode<synchronous>, transform_indices = @transform_6, window_bounds = array<i64: 16, 8>}, {pipeline_mode = #tpu.pipeline_mode<synchronous>, transform_indices = @transform_7, window_bounds = array<i64: 8, 1>}, {pipeline_mode = #tpu.pipeline_mode<synchronous>, transform_indices = @transform_8, window_bounds = array<i64: 24, 32>}, {pipeline_mode = #tpu.pipeline_mode<synchronous>, transform_indices = @transform_9, window_bounds = array<i64: 1, 32>}, {pipeline_mode = #tpu.pipeline_mode<synchronous>, transform_indices = @transform_10, window_bounds = array<i64: 32, 32>}, {pipeline_mode = #tpu.pipeline_mode<synchronous>, transform_indices = @transform_11, window_bounds = array<i64: 32, 32>}, {pipeline_mode = #tpu.pipeline_mode<synchronous>, transform_indices = @transform_12, window_bounds = array<i64: 32, 4>}, {pipeline_mode = #tpu.pipeline_mode<synchronous>, transform_indices = @transform_13, window_bounds = array<i64: 29, 32>}, {transform_indices = @transform_14, window_bounds = array<i64: 8, 8>}, {transform_indices = @transform_15, window_bounds = array<i64: 8, 32>}]} {
    %c0 = arith.constant 0 : index
    %c0_0 = arith.constant 0 : index
    %0 = vector.load %arg1[%c0, %c0_0] : memref<8x32xf32, #tpu.memory_space<vmem>>, vector<8x32xf32>
    %1 = vector.extract_strided_slice %0 {offsets = [0, 0], sizes = [8, 24], strides = [1, 1]} : vector<8x32xf32> to vector<8x24xf32>
    %c0_1 = arith.constant 0 : index
    %c0_2 = arith.constant 0 : index
    %2 = vector.load %arg2[%c0_1, %c0_2] : memref<32x32xf32, #tpu.memory_space<vmem>>, vector<32x32xf32>
    %cst = arith.constant dense<0.000000e+00> : vector<8x32xf32>
    %3 = tpu.matmul %0, %2, %cst {dimension_numbers = #tpu.dot_dimension_numbers<[1], [0], [0], [1], [0, 0, 1, 1], [], []>} : vector<8x32xf32>, vector<32x32xf32>, vector<8x32xf32> -> vector<8x32xf32>
    %c0_3 = arith.constant 0 : index
    %c0_4 = arith.constant 0 : index
    %4 = vector.load %arg14[%c0_3, %c0_4] : memref<29x32xf32, #tpu.memory_space<vmem>>, vector<1x32xf32>
    %c1 = arith.constant 1 : index
    %c0_5 = arith.constant 0 : index
    %5 = vector.load %arg14[%c1, %c0_5] : memref<29x32xf32, #tpu.memory_space<vmem>>, vector<1x32xf32>
    %c2 = arith.constant 2 : index
    %c0_6 = arith.constant 0 : index
    %6 = vector.load %arg14[%c2, %c0_6] : memref<29x32xf32, #tpu.memory_space<vmem>>, vector<1x32xf32>
    %7 = vector.broadcast %4 : vector<1x32xf32> to vector<8x32xf32>
    %8 = arith.addf %3, %7 : vector<8x32xf32>
    %cst_7 = arith.constant dense<0.000000e+00> : vector<8xf32>
    %9 = vector.multi_reduction <add>, %8, %cst_7 [1] : vector<8x32xf32> to vector<8xf32>
    %10 = vector.shape_cast %9 : vector<8xf32> to vector<8x1xf32>
    %11 = arith.mulf %8, %8 : vector<8x32xf32>
    %cst_8 = arith.constant dense<0.000000e+00> : vector<8xf32>
    %12 = vector.multi_reduction <add>, %11, %cst_8 [1] : vector<8x32xf32> to vector<8xf32>
    %13 = vector.shape_cast %12 : vector<8xf32> to vector<8x1xf32>
    %cst_9 = arith.constant 3.125000e-02 : f32
    %14 = vector.broadcast %cst_9 : f32 to vector<8x1xf32>
    %15 = arith.mulf %10, %14 : vector<8x1xf32>
    %cst_10 = arith.constant 3.125000e-02 : f32
    %16 = vector.broadcast %cst_10 : f32 to vector<8x1xf32>
    %17 = arith.mulf %13, %16 : vector<8x1xf32>
    %18 = arith.mulf %15, %15 : vector<8x1xf32>
    %19 = arith.subf %17, %18 : vector<8x1xf32>
    %20 = vector.broadcast %15 : vector<8x1xf32> to vector<8x32xf32>
    %21 = arith.subf %8, %20 : vector<8x32xf32>
    %cst_11 = arith.constant 9.99999974E-6 : f32
    %22 = vector.broadcast %cst_11 : f32 to vector<8x1xf32>
    %23 = arith.addf %19, %22 : vector<8x1xf32>
    %24 = math.rsqrt %23 : vector<8x1xf32>
    %25 = vector.broadcast %24 : vector<8x1xf32> to vector<8x32xf32>
    %26 = arith.mulf %21, %25 : vector<8x32xf32>
    %27 = vector.broadcast %5 : vector<1x32xf32> to vector<8x32xf32>
    %28 = arith.mulf %26, %27 : vector<8x32xf32>
    %29 = vector.broadcast %6 : vector<1x32xf32> to vector<8x32xf32>
    %30 = arith.addf %28, %29 : vector<8x32xf32>
    %cst_12 = arith.constant 0.000000e+00 : f32
    %31 = vector.broadcast %cst_12 : f32 to vector<8x32xf32>
    %32 = arith.cmpf oge, %30, %31 : vector<8x32xf32>
    %cst_13 = arith.constant 1.000000e-01 : f32
    %33 = vector.broadcast %cst_13 : f32 to vector<8x32xf32>
    %34 = arith.mulf %33, %30 : vector<8x32xf32>
    %35 = arith.select %32, %30, %34 : vector<8x32xi1>, vector<8x32xf32>
    %c0_14 = arith.constant 0 : index
    %c0_15 = arith.constant 0 : index
    %36 = vector.load %arg3[%c0_14, %c0_15] : memref<32x32xf32, #tpu.memory_space<vmem>>, vector<32x32xf32>
    %cst_16 = arith.constant dense<0.000000e+00> : vector<8x32xf32>
    %37 = tpu.matmul %35, %36, %cst_16 {dimension_numbers = #tpu.dot_dimension_numbers<[1], [0], [0], [1], [0, 0, 1, 1], [], []>} : vector<8x32xf32>, vector<32x32xf32>, vector<8x32xf32> -> vector<8x32xf32>
    %c3 = arith.constant 3 : index
    %c0_17 = arith.constant 0 : index
    %38 = vector.load %arg14[%c3, %c0_17] : memref<29x32xf32, #tpu.memory_space<vmem>>, vector<1x32xf32>
    %c4 = arith.constant 4 : index
    %c0_18 = arith.constant 0 : index
    %39 = vector.load %arg14[%c4, %c0_18] : memref<29x32xf32, #tpu.memory_space<vmem>>, vector<1x32xf32>
    %c5 = arith.constant 5 : index
    %c0_19 = arith.constant 0 : index
    %40 = vector.load %arg14[%c5, %c0_19] : memref<29x32xf32, #tpu.memory_space<vmem>>, vector<1x32xf32>
    %41 = vector.broadcast %38 : vector<1x32xf32> to vector<8x32xf32>
    %42 = arith.addf %37, %41 : vector<8x32xf32>
    %cst_20 = arith.constant dense<0.000000e+00> : vector<8xf32>
    %43 = vector.multi_reduction <add>, %42, %cst_20 [1] : vector<8x32xf32> to vector<8xf32>
    %44 = vector.shape_cast %43 : vector<8xf32> to vector<8x1xf32>
    %45 = arith.mulf %42, %42 : vector<8x32xf32>
    %cst_21 = arith.constant dense<0.000000e+00> : vector<8xf32>
    %46 = vector.multi_reduction <add>, %45, %cst_21 [1] : vector<8x32xf32> to vector<8xf32>
    %47 = vector.shape_cast %46 : vector<8xf32> to vector<8x1xf32>
    %cst_22 = arith.constant 3.125000e-02 : f32
    %48 = vector.broadcast %cst_22 : f32 to vector<8x1xf32>
    %49 = arith.mulf %44, %48 : vector<8x1xf32>
    %cst_23 = arith.constant 3.125000e-02 : f32
    %50 = vector.broadcast %cst_23 : f32 to vector<8x1xf32>
    %51 = arith.mulf %47, %50 : vector<8x1xf32>
    %52 = arith.mulf %49, %49 : vector<8x1xf32>
    %53 = arith.subf %51, %52 : vector<8x1xf32>
    %54 = vector.broadcast %49 : vector<8x1xf32> to vector<8x32xf32>
    %55 = arith.subf %42, %54 : vector<8x32xf32>
    %cst_24 = arith.constant 9.99999974E-6 : f32
    %56 = vector.broadcast %cst_24 : f32 to vector<8x1xf32>
    %57 = arith.addf %53, %56 : vector<8x1xf32>
    %58 = math.rsqrt %57 : vector<8x1xf32>
    %59 = vector.broadcast %58 : vector<8x1xf32> to vector<8x32xf32>
    %60 = arith.mulf %55, %59 : vector<8x32xf32>
    %61 = vector.broadcast %39 : vector<1x32xf32> to vector<8x32xf32>
    %62 = arith.mulf %60, %61 : vector<8x32xf32>
    %63 = vector.broadcast %40 : vector<1x32xf32> to vector<8x32xf32>
    %64 = arith.addf %62, %63 : vector<8x32xf32>
    %cst_25 = arith.constant 0.000000e+00 : f32
    %65 = vector.broadcast %cst_25 : f32 to vector<8x32xf32>
    %66 = arith.cmpf oge, %64, %65 : vector<8x32xf32>
    %cst_26 = arith.constant 1.000000e-01 : f32
    %67 = vector.broadcast %cst_26 : f32 to vector<8x32xf32>
    %68 = arith.mulf %67, %64 : vector<8x32xf32>
    %69 = arith.select %66, %64, %68 : vector<8x32xi1>, vector<8x32xf32>
    %c0_27 = arith.constant 0 : index
    %c0_28 = arith.constant 0 : index
    %70 = vector.load %arg4[%c0_27, %c0_28] : memref<32x32xf32, #tpu.memory_space<vmem>>, vector<32x32xf32>
    %cst_29 = arith.constant dense<0.000000e+00> : vector<8x32xf32>
    %71 = tpu.matmul %69, %70, %cst_29 {dimension_numbers = #tpu.dot_dimension_numbers<[1], [0], [0], [1], [0, 0, 1, 1], [], []>} : vector<8x32xf32>, vector<32x32xf32>, vector<8x32xf32> -> vector<8x32xf32>
    %c6 = arith.constant 6 : index
    %c0_30 = arith.constant 0 : index
    %72 = vector.load %arg14[%c6, %c0_30] : memref<29x32xf32, #tpu.memory_space<vmem>>, vector<1x32xf32>
    %c7 = arith.constant 7 : index
    %c0_31 = arith.constant 0 : index
    %73 = vector.load %arg14[%c7, %c0_31] : memref<29x32xf32, #tpu.memory_space<vmem>>, vector<1x32xf32>
    %c8 = arith.constant 8 : index
    %c0_32 = arith.constant 0 : index
    %74 = vector.load %arg14[%c8, %c0_32] : memref<29x32xf32, #tpu.memory_space<vmem>>, vector<1x32xf32>
    %75 = vector.broadcast %72 : vector<1x32xf32> to vector<8x32xf32>
    %76 = arith.addf %71, %75 : vector<8x32xf32>
    %cst_33 = arith.constant dense<0.000000e+00> : vector<8xf32>
    %77 = vector.multi_reduction <add>, %76, %cst_33 [1] : vector<8x32xf32> to vector<8xf32>
    %78 = vector.shape_cast %77 : vector<8xf32> to vector<8x1xf32>
    %79 = arith.mulf %76, %76 : vector<8x32xf32>
    %cst_34 = arith.constant dense<0.000000e+00> : vector<8xf32>
    %80 = vector.multi_reduction <add>, %79, %cst_34 [1] : vector<8x32xf32> to vector<8xf32>
    %81 = vector.shape_cast %80 : vector<8xf32> to vector<8x1xf32>
    %cst_35 = arith.constant 3.125000e-02 : f32
    %82 = vector.broadcast %cst_35 : f32 to vector<8x1xf32>
    %83 = arith.mulf %78, %82 : vector<8x1xf32>
    %cst_36 = arith.constant 3.125000e-02 : f32
    %84 = vector.broadcast %cst_36 : f32 to vector<8x1xf32>
    %85 = arith.mulf %81, %84 : vector<8x1xf32>
    %86 = arith.mulf %83, %83 : vector<8x1xf32>
    %87 = arith.subf %85, %86 : vector<8x1xf32>
    %88 = vector.broadcast %83 : vector<8x1xf32> to vector<8x32xf32>
    %89 = arith.subf %76, %88 : vector<8x32xf32>
    %cst_37 = arith.constant 9.99999974E-6 : f32
    %90 = vector.broadcast %cst_37 : f32 to vector<8x1xf32>
    %91 = arith.addf %87, %90 : vector<8x1xf32>
    %92 = math.rsqrt %91 : vector<8x1xf32>
    %93 = vector.broadcast %92 : vector<8x1xf32> to vector<8x32xf32>
    %94 = arith.mulf %89, %93 : vector<8x32xf32>
    %95 = vector.broadcast %73 : vector<1x32xf32> to vector<8x32xf32>
    %96 = arith.mulf %94, %95 : vector<8x32xf32>
    %97 = vector.broadcast %74 : vector<1x32xf32> to vector<8x32xf32>
    %98 = arith.addf %96, %97 : vector<8x32xf32>
    %cst_38 = arith.constant 0.000000e+00 : f32
    %99 = vector.broadcast %cst_38 : f32 to vector<8x32xf32>
    %100 = arith.cmpf oge, %98, %99 : vector<8x32xf32>
    %cst_39 = arith.constant 1.000000e-01 : f32
    %101 = vector.broadcast %cst_39 : f32 to vector<8x32xf32>
    %102 = arith.mulf %101, %98 : vector<8x32xf32>
    %103 = arith.select %100, %98, %102 : vector<8x32xi1>, vector<8x32xf32>
    %c0_40 = arith.constant 0 : index
    %c0_41 = arith.constant 0 : index
    %104 = vector.load %arg5[%c0_40, %c0_41] : memref<32x4xf32, #tpu.memory_space<vmem>>, vector<32x4xf32>
    %cst_42 = arith.constant dense<0.000000e+00> : vector<8x4xf32>
    %105 = tpu.matmul %103, %104, %cst_42 {dimension_numbers = #tpu.dot_dimension_numbers<[1], [0], [0], [1], [0, 0, 1, 1], [], []>} : vector<8x32xf32>, vector<32x4xf32>, vector<8x4xf32> -> vector<8x4xf32>
    %c9 = arith.constant 9 : index
    %c0_43 = arith.constant 0 : index
    %106 = vector.load %arg14[%c9, %c0_43] : memref<29x32xf32, #tpu.memory_space<vmem>>, vector<1x4xf32>
    %107 = vector.broadcast %106 : vector<1x4xf32> to vector<8x4xf32>
    %108 = arith.addf %105, %107 : vector<8x4xf32>
    %c0_44 = arith.constant 0 : index
    %c0_45 = arith.constant 0 : index
    %109 = vector.load %arg6[%c0_44, %c0_45] : memref<32x16xf32, #tpu.memory_space<vmem>>, vector<32x16xf32>
    %cst_46 = arith.constant dense<0.000000e+00> : vector<8x16xf32>
    %110 = tpu.matmul %103, %109, %cst_46 {dimension_numbers = #tpu.dot_dimension_numbers<[1], [0], [0], [1], [0, 0, 1, 1], [], []>} : vector<8x32xf32>, vector<32x16xf32>, vector<8x16xf32> -> vector<8x16xf32>
    %c10 = arith.constant 10 : index
    %c0_47 = arith.constant 0 : index
    %111 = vector.load %arg14[%c10, %c0_47] : memref<29x32xf32, #tpu.memory_space<vmem>>, vector<1x16xf32>
    %c11 = arith.constant 11 : index
    %c0_48 = arith.constant 0 : index
    %112 = vector.load %arg14[%c11, %c0_48] : memref<29x32xf32, #tpu.memory_space<vmem>>, vector<1x16xf32>
    %c12 = arith.constant 12 : index
    %c0_49 = arith.constant 0 : index
    %113 = vector.load %arg14[%c12, %c0_49] : memref<29x32xf32, #tpu.memory_space<vmem>>, vector<1x16xf32>
    %114 = vector.broadcast %111 : vector<1x16xf32> to vector<8x16xf32>
    %115 = arith.addf %110, %114 : vector<8x16xf32>
    %cst_50 = arith.constant dense<0.000000e+00> : vector<8xf32>
    %116 = vector.multi_reduction <add>, %115, %cst_50 [1] : vector<8x16xf32> to vector<8xf32>
    %117 = vector.shape_cast %116 : vector<8xf32> to vector<8x1xf32>
    %118 = arith.mulf %115, %115 : vector<8x16xf32>
    %cst_51 = arith.constant dense<0.000000e+00> : vector<8xf32>
    %119 = vector.multi_reduction <add>, %118, %cst_51 [1] : vector<8x16xf32> to vector<8xf32>
    %120 = vector.shape_cast %119 : vector<8xf32> to vector<8x1xf32>
    %cst_52 = arith.constant 6.250000e-02 : f32
    %121 = vector.broadcast %cst_52 : f32 to vector<8x1xf32>
    %122 = arith.mulf %117, %121 : vector<8x1xf32>
    %cst_53 = arith.constant 6.250000e-02 : f32
    %123 = vector.broadcast %cst_53 : f32 to vector<8x1xf32>
    %124 = arith.mulf %120, %123 : vector<8x1xf32>
    %125 = arith.mulf %122, %122 : vector<8x1xf32>
    %126 = arith.subf %124, %125 : vector<8x1xf32>
    %127 = vector.broadcast %122 : vector<8x1xf32> to vector<8x16xf32>
    %128 = arith.subf %115, %127 : vector<8x16xf32>
    %cst_54 = arith.constant 9.99999974E-6 : f32
    %129 = vector.broadcast %cst_54 : f32 to vector<8x1xf32>
    %130 = arith.addf %126, %129 : vector<8x1xf32>
    %131 = math.rsqrt %130 : vector<8x1xf32>
    %132 = vector.broadcast %131 : vector<8x1xf32> to vector<8x16xf32>
    %133 = arith.mulf %128, %132 : vector<8x16xf32>
    %134 = vector.broadcast %112 : vector<1x16xf32> to vector<8x16xf32>
    %135 = arith.mulf %133, %134 : vector<8x16xf32>
    %136 = vector.broadcast %113 : vector<1x16xf32> to vector<8x16xf32>
    %137 = arith.addf %135, %136 : vector<8x16xf32>
    %cst_55 = arith.constant 0.000000e+00 : f32
    %138 = vector.broadcast %cst_55 : f32 to vector<8x16xf32>
    %139 = arith.cmpf oge, %137, %138 : vector<8x16xf32>
    %cst_56 = arith.constant 1.000000e-01 : f32
    %140 = vector.broadcast %cst_56 : f32 to vector<8x16xf32>
    %141 = arith.mulf %140, %137 : vector<8x16xf32>
    %142 = arith.select %139, %137, %141 : vector<8x16xi1>, vector<8x16xf32>
    %c0_57 = arith.constant 0 : index
    %c0_58 = arith.constant 0 : index
    %143 = vector.load %arg7[%c0_57, %c0_58] : memref<16x8xf32, #tpu.memory_space<vmem>>, vector<16x8xf32>
    %cst_59 = arith.constant dense<0.000000e+00> : vector<8x8xf32>
    %144 = tpu.matmul %142, %143, %cst_59 {dimension_numbers = #tpu.dot_dimension_numbers<[1], [0], [0], [1], [0, 0, 1, 1], [], []>} : vector<8x16xf32>, vector<16x8xf32>, vector<8x8xf32> -> vector<8x8xf32>
    %c13 = arith.constant 13 : index
    %c0_60 = arith.constant 0 : index
    %145 = vector.load %arg14[%c13, %c0_60] : memref<29x32xf32, #tpu.memory_space<vmem>>, vector<1x8xf32>
    %c14 = arith.constant 14 : index
    %c0_61 = arith.constant 0 : index
    %146 = vector.load %arg14[%c14, %c0_61] : memref<29x32xf32, #tpu.memory_space<vmem>>, vector<1x8xf32>
    %c15 = arith.constant 15 : index
    %c0_62 = arith.constant 0 : index
    %147 = vector.load %arg14[%c15, %c0_62] : memref<29x32xf32, #tpu.memory_space<vmem>>, vector<1x8xf32>
    %148 = vector.broadcast %145 : vector<1x8xf32> to vector<8x8xf32>
    %149 = arith.addf %144, %148 : vector<8x8xf32>
    %cst_63 = arith.constant dense<0.000000e+00> : vector<8xf32>
    %150 = vector.multi_reduction <add>, %149, %cst_63 [1] : vector<8x8xf32> to vector<8xf32>
    %151 = vector.shape_cast %150 : vector<8xf32> to vector<8x1xf32>
    %152 = arith.mulf %149, %149 : vector<8x8xf32>
    %cst_64 = arith.constant dense<0.000000e+00> : vector<8xf32>
    %153 = vector.multi_reduction <add>, %152, %cst_64 [1] : vector<8x8xf32> to vector<8xf32>
    %154 = vector.shape_cast %153 : vector<8xf32> to vector<8x1xf32>
    %cst_65 = arith.constant 1.250000e-01 : f32
    %155 = vector.broadcast %cst_65 : f32 to vector<8x1xf32>
    %156 = arith.mulf %151, %155 : vector<8x1xf32>
    %cst_66 = arith.constant 1.250000e-01 : f32
    %157 = vector.broadcast %cst_66 : f32 to vector<8x1xf32>
    %158 = arith.mulf %154, %157 : vector<8x1xf32>
    %159 = arith.mulf %156, %156 : vector<8x1xf32>
    %160 = arith.subf %158, %159 : vector<8x1xf32>
    %161 = vector.broadcast %156 : vector<8x1xf32> to vector<8x8xf32>
    %162 = arith.subf %149, %161 : vector<8x8xf32>
    %cst_67 = arith.constant 9.99999974E-6 : f32
    %163 = vector.broadcast %cst_67 : f32 to vector<8x1xf32>
    %164 = arith.addf %160, %163 : vector<8x1xf32>
    %165 = math.rsqrt %164 : vector<8x1xf32>
    %166 = vector.broadcast %165 : vector<8x1xf32> to vector<8x8xf32>
    %167 = arith.mulf %162, %166 : vector<8x8xf32>
    %168 = vector.broadcast %146 : vector<1x8xf32> to vector<8x8xf32>
    %169 = arith.mulf %167, %168 : vector<8x8xf32>
    %170 = vector.broadcast %147 : vector<1x8xf32> to vector<8x8xf32>
    %171 = arith.addf %169, %170 : vector<8x8xf32>
    %cst_68 = arith.constant 0.000000e+00 : f32
    %172 = vector.broadcast %cst_68 : f32 to vector<8x8xf32>
    %173 = arith.cmpf oge, %171, %172 : vector<8x8xf32>
    %cst_69 = arith.constant 1.000000e-01 : f32
    %174 = vector.broadcast %cst_69 : f32 to vector<8x8xf32>
    %175 = arith.mulf %174, %171 : vector<8x8xf32>
    %176 = arith.select %173, %171, %175 : vector<8x8xi1>, vector<8x8xf32>
    %c0_70 = arith.constant 0 : index
    %c0_71 = arith.constant 0 : index
    %177 = vector.load %arg8[%c0_70, %c0_71] : memref<8x1xf32, #tpu.memory_space<vmem>>, vector<8x1xf32>
    %cst_72 = arith.constant dense<0.000000e+00> : vector<8x1xf32>
    %178 = tpu.matmul %176, %177, %cst_72 {dimension_numbers = #tpu.dot_dimension_numbers<[1], [0], [0], [1], [0, 0, 1, 1], [], []>} : vector<8x8xf32>, vector<8x1xf32>, vector<8x1xf32> -> vector<8x1xf32>
    %c16 = arith.constant 16 : index
    %c0_73 = arith.constant 0 : index
    %179 = vector.load %arg14[%c16, %c0_73] : memref<29x32xf32, #tpu.memory_space<vmem>>, vector<1x1xf32>
    %c17 = arith.constant 17 : index
    %c0_74 = arith.constant 0 : index
    %180 = vector.load %arg14[%c17, %c0_74] : memref<29x32xf32, #tpu.memory_space<vmem>>, vector<1x1xf32>
    %c18 = arith.constant 18 : index
    %c0_75 = arith.constant 0 : index
    %181 = vector.load %arg14[%c18, %c0_75] : memref<29x32xf32, #tpu.memory_space<vmem>>, vector<1x1xf32>
    %182 = vector.broadcast %179 : vector<1x1xf32> to vector<8x1xf32>
    %183 = arith.addf %178, %182 : vector<8x1xf32>
    %cst_76 = arith.constant dense<0.000000e+00> : vector<8xf32>
    %184 = vector.multi_reduction <add>, %183, %cst_76 [1] : vector<8x1xf32> to vector<8xf32>
    %185 = vector.shape_cast %184 : vector<8xf32> to vector<8x1xf32>
    %186 = arith.mulf %183, %183 : vector<8x1xf32>
    %cst_77 = arith.constant dense<0.000000e+00> : vector<8xf32>
    %187 = vector.multi_reduction <add>, %186, %cst_77 [1] : vector<8x1xf32> to vector<8xf32>
    %188 = vector.shape_cast %187 : vector<8xf32> to vector<8x1xf32>
    %cst_78 = arith.constant 1.000000e+00 : f32
    %189 = vector.broadcast %cst_78 : f32 to vector<8x1xf32>
    %190 = arith.mulf %185, %189 : vector<8x1xf32>
    %cst_79 = arith.constant 1.000000e+00 : f32
    %191 = vector.broadcast %cst_79 : f32 to vector<8x1xf32>
    %192 = arith.mulf %188, %191 : vector<8x1xf32>
    %193 = arith.mulf %190, %190 : vector<8x1xf32>
    %194 = arith.subf %192, %193 : vector<8x1xf32>
    %195 = arith.subf %183, %190 : vector<8x1xf32>
    %cst_80 = arith.constant 9.99999974E-6 : f32
    %196 = vector.broadcast %cst_80 : f32 to vector<8x1xf32>
    %197 = arith.addf %194, %196 : vector<8x1xf32>
    %198 = math.rsqrt %197 : vector<8x1xf32>
    %199 = arith.mulf %195, %198 : vector<8x1xf32>
    %200 = vector.broadcast %180 : vector<1x1xf32> to vector<8x1xf32>
    %201 = arith.mulf %199, %200 : vector<8x1xf32>
    %202 = vector.broadcast %181 : vector<1x1xf32> to vector<8x1xf32>
    %203 = arith.addf %201, %202 : vector<8x1xf32>
    %cst_81 = arith.constant 0.000000e+00 : f32
    %204 = vector.broadcast %cst_81 : f32 to vector<8x1xf32>
    %205 = arith.cmpf oge, %203, %204 : vector<8x1xf32>
    %cst_82 = arith.constant 1.000000e-01 : f32
    %206 = vector.broadcast %cst_82 : f32 to vector<8x1xf32>
    %207 = arith.mulf %206, %203 : vector<8x1xf32>
    %208 = arith.select %205, %203, %207 : vector<8x1xi1>, vector<8x1xf32>
    %c0_83 = arith.constant 0 : index
    %c0_84 = arith.constant 0 : index
    %209 = vector.load %arg9[%c0_83, %c0_84] : memref<24x32xf32, #tpu.memory_space<vmem>>, vector<24x32xf32>
    %cst_85 = arith.constant dense<0.000000e+00> : vector<8x32xf32>
    %210 = tpu.matmul %1, %209, %cst_85 {dimension_numbers = #tpu.dot_dimension_numbers<[1], [0], [0], [1], [0, 0, 1, 1], [], []>} : vector<8x24xf32>, vector<24x32xf32>, vector<8x32xf32> -> vector<8x32xf32>
    %c0_86 = arith.constant 0 : index
    %c0_87 = arith.constant 0 : index
    %211 = vector.load %arg10[%c0_86, %c0_87] : memref<1x32xf32, #tpu.memory_space<vmem>>, vector<1x32xf32>
    %212 = vector.broadcast %208 : vector<8x1xf32> to vector<8x32xf32>
    %213 = vector.broadcast %211 : vector<1x32xf32> to vector<8x32xf32>
    %214 = arith.mulf %212, %213 : vector<8x32xf32>
    %215 = arith.addf %210, %214 : vector<8x32xf32>
    %c19 = arith.constant 19 : index
    %c0_88 = arith.constant 0 : index
    %216 = vector.load %arg14[%c19, %c0_88] : memref<29x32xf32, #tpu.memory_space<vmem>>, vector<1x32xf32>
    %c20 = arith.constant 20 : index
    %c0_89 = arith.constant 0 : index
    %217 = vector.load %arg14[%c20, %c0_89] : memref<29x32xf32, #tpu.memory_space<vmem>>, vector<1x32xf32>
    %c21 = arith.constant 21 : index
    %c0_90 = arith.constant 0 : index
    %218 = vector.load %arg14[%c21, %c0_90] : memref<29x32xf32, #tpu.memory_space<vmem>>, vector<1x32xf32>
    %219 = vector.broadcast %216 : vector<1x32xf32> to vector<8x32xf32>
    %220 = arith.addf %215, %219 : vector<8x32xf32>
    %cst_91 = arith.constant dense<0.000000e+00> : vector<8xf32>
    %221 = vector.multi_reduction <add>, %220, %cst_91 [1] : vector<8x32xf32> to vector<8xf32>
    %222 = vector.shape_cast %221 : vector<8xf32> to vector<8x1xf32>
    %223 = arith.mulf %220, %220 : vector<8x32xf32>
    %cst_92 = arith.constant dense<0.000000e+00> : vector<8xf32>
    %224 = vector.multi_reduction <add>, %223, %cst_92 [1] : vector<8x32xf32> to vector<8xf32>
    %225 = vector.shape_cast %224 : vector<8xf32> to vector<8x1xf32>
    %cst_93 = arith.constant 3.125000e-02 : f32
    %226 = vector.broadcast %cst_93 : f32 to vector<8x1xf32>
    %227 = arith.mulf %222, %226 : vector<8x1xf32>
    %cst_94 = arith.constant 3.125000e-02 : f32
    %228 = vector.broadcast %cst_94 : f32 to vector<8x1xf32>
    %229 = arith.mulf %225, %228 : vector<8x1xf32>
    %230 = arith.mulf %227, %227 : vector<8x1xf32>
    %231 = arith.subf %229, %230 : vector<8x1xf32>
    %232 = vector.broadcast %227 : vector<8x1xf32> to vector<8x32xf32>
    %233 = arith.subf %220, %232 : vector<8x32xf32>
    %cst_95 = arith.constant 9.99999974E-6 : f32
    %234 = vector.broadcast %cst_95 : f32 to vector<8x1xf32>
    %235 = arith.addf %231, %234 : vector<8x1xf32>
    %236 = math.rsqrt %235 : vector<8x1xf32>
    %237 = vector.broadcast %236 : vector<8x1xf32> to vector<8x32xf32>
    %238 = arith.mulf %233, %237 : vector<8x32xf32>
    %239 = vector.broadcast %217 : vector<1x32xf32> to vector<8x32xf32>
    %240 = arith.mulf %238, %239 : vector<8x32xf32>
    %241 = vector.broadcast %218 : vector<1x32xf32> to vector<8x32xf32>
    %242 = arith.addf %240, %241 : vector<8x32xf32>
    %cst_96 = arith.constant 0.000000e+00 : f32
    %243 = vector.broadcast %cst_96 : f32 to vector<8x32xf32>
    %244 = arith.cmpf oge, %242, %243 : vector<8x32xf32>
    %cst_97 = arith.constant 1.000000e-01 : f32
    %245 = vector.broadcast %cst_97 : f32 to vector<8x32xf32>
    %246 = arith.mulf %245, %242 : vector<8x32xf32>
    %247 = arith.select %244, %242, %246 : vector<8x32xi1>, vector<8x32xf32>
    %c0_98 = arith.constant 0 : index
    %c0_99 = arith.constant 0 : index
    %248 = vector.load %arg11[%c0_98, %c0_99] : memref<32x32xf32, #tpu.memory_space<vmem>>, vector<32x32xf32>
    %cst_100 = arith.constant dense<0.000000e+00> : vector<8x32xf32>
    %249 = tpu.matmul %247, %248, %cst_100 {dimension_numbers = #tpu.dot_dimension_numbers<[1], [0], [0], [1], [0, 0, 1, 1], [], []>} : vector<8x32xf32>, vector<32x32xf32>, vector<8x32xf32> -> vector<8x32xf32>
    %c22 = arith.constant 22 : index
    %c0_101 = arith.constant 0 : index
    %250 = vector.load %arg14[%c22, %c0_101] : memref<29x32xf32, #tpu.memory_space<vmem>>, vector<1x32xf32>
    %c23 = arith.constant 23 : index
    %c0_102 = arith.constant 0 : index
    %251 = vector.load %arg14[%c23, %c0_102] : memref<29x32xf32, #tpu.memory_space<vmem>>, vector<1x32xf32>
    %c24 = arith.constant 24 : index
    %c0_103 = arith.constant 0 : index
    %252 = vector.load %arg14[%c24, %c0_103] : memref<29x32xf32, #tpu.memory_space<vmem>>, vector<1x32xf32>
    %253 = vector.broadcast %250 : vector<1x32xf32> to vector<8x32xf32>
    %254 = arith.addf %249, %253 : vector<8x32xf32>
    %cst_104 = arith.constant dense<0.000000e+00> : vector<8xf32>
    %255 = vector.multi_reduction <add>, %254, %cst_104 [1] : vector<8x32xf32> to vector<8xf32>
    %256 = vector.shape_cast %255 : vector<8xf32> to vector<8x1xf32>
    %257 = arith.mulf %254, %254 : vector<8x32xf32>
    %cst_105 = arith.constant dense<0.000000e+00> : vector<8xf32>
    %258 = vector.multi_reduction <add>, %257, %cst_105 [1] : vector<8x32xf32> to vector<8xf32>
    %259 = vector.shape_cast %258 : vector<8xf32> to vector<8x1xf32>
    %cst_106 = arith.constant 3.125000e-02 : f32
    %260 = vector.broadcast %cst_106 : f32 to vector<8x1xf32>
    %261 = arith.mulf %256, %260 : vector<8x1xf32>
    %cst_107 = arith.constant 3.125000e-02 : f32
    %262 = vector.broadcast %cst_107 : f32 to vector<8x1xf32>
    %263 = arith.mulf %259, %262 : vector<8x1xf32>
    %264 = arith.mulf %261, %261 : vector<8x1xf32>
    %265 = arith.subf %263, %264 : vector<8x1xf32>
    %266 = vector.broadcast %261 : vector<8x1xf32> to vector<8x32xf32>
    %267 = arith.subf %254, %266 : vector<8x32xf32>
    %cst_108 = arith.constant 9.99999974E-6 : f32
    %268 = vector.broadcast %cst_108 : f32 to vector<8x1xf32>
    %269 = arith.addf %265, %268 : vector<8x1xf32>
    %270 = math.rsqrt %269 : vector<8x1xf32>
    %271 = vector.broadcast %270 : vector<8x1xf32> to vector<8x32xf32>
    %272 = arith.mulf %267, %271 : vector<8x32xf32>
    %273 = vector.broadcast %251 : vector<1x32xf32> to vector<8x32xf32>
    %274 = arith.mulf %272, %273 : vector<8x32xf32>
    %275 = vector.broadcast %252 : vector<1x32xf32> to vector<8x32xf32>
    %276 = arith.addf %274, %275 : vector<8x32xf32>
    %cst_109 = arith.constant 0.000000e+00 : f32
    %277 = vector.broadcast %cst_109 : f32 to vector<8x32xf32>
    %278 = arith.cmpf oge, %276, %277 : vector<8x32xf32>
    %cst_110 = arith.constant 1.000000e-01 : f32
    %279 = vector.broadcast %cst_110 : f32 to vector<8x32xf32>
    %280 = arith.mulf %279, %276 : vector<8x32xf32>
    %281 = arith.select %278, %276, %280 : vector<8x32xi1>, vector<8x32xf32>
    %c0_111 = arith.constant 0 : index
    %c0_112 = arith.constant 0 : index
    %282 = vector.load %arg12[%c0_111, %c0_112] : memref<32x32xf32, #tpu.memory_space<vmem>>, vector<32x32xf32>
    %cst_113 = arith.constant dense<0.000000e+00> : vector<8x32xf32>
    %283 = tpu.matmul %281, %282, %cst_113 {dimension_numbers = #tpu.dot_dimension_numbers<[1], [0], [0], [1], [0, 0, 1, 1], [], []>} : vector<8x32xf32>, vector<32x32xf32>, vector<8x32xf32> -> vector<8x32xf32>
    %c25 = arith.constant 25 : index
    %c0_114 = arith.constant 0 : index
    %284 = vector.load %arg14[%c25, %c0_114] : memref<29x32xf32, #tpu.memory_space<vmem>>, vector<1x32xf32>
    %c26 = arith.constant 26 : index
    %c0_115 = arith.constant 0 : index
    %285 = vector.load %arg14[%c26, %c0_115] : memref<29x32xf32, #tpu.memory_space<vmem>>, vector<1x32xf32>
    %c27 = arith.constant 27 : index
    %c0_116 = arith.constant 0 : index
    %286 = vector.load %arg14[%c27, %c0_116] : memref<29x32xf32, #tpu.memory_space<vmem>>, vector<1x32xf32>
    %287 = vector.broadcast %284 : vector<1x32xf32> to vector<8x32xf32>
    %288 = arith.addf %283, %287 : vector<8x32xf32>
    %cst_117 = arith.constant dense<0.000000e+00> : vector<8xf32>
    %289 = vector.multi_reduction <add>, %288, %cst_117 [1] : vector<8x32xf32> to vector<8xf32>
    %290 = vector.shape_cast %289 : vector<8xf32> to vector<8x1xf32>
    %291 = arith.mulf %288, %288 : vector<8x32xf32>
    %cst_118 = arith.constant dense<0.000000e+00> : vector<8xf32>
    %292 = vector.multi_reduction <add>, %291, %cst_118 [1] : vector<8x32xf32> to vector<8xf32>
    %293 = vector.shape_cast %292 : vector<8xf32> to vector<8x1xf32>
    %cst_119 = arith.constant 3.125000e-02 : f32
    %294 = vector.broadcast %cst_119 : f32 to vector<8x1xf32>
    %295 = arith.mulf %290, %294 : vector<8x1xf32>
    %cst_120 = arith.constant 3.125000e-02 : f32
    %296 = vector.broadcast %cst_120 : f32 to vector<8x1xf32>
    %297 = arith.mulf %293, %296 : vector<8x1xf32>
    %298 = arith.mulf %295, %295 : vector<8x1xf32>
    %299 = arith.subf %297, %298 : vector<8x1xf32>
    %300 = vector.broadcast %295 : vector<8x1xf32> to vector<8x32xf32>
    %301 = arith.subf %288, %300 : vector<8x32xf32>
    %cst_121 = arith.constant 9.99999974E-6 : f32
    %302 = vector.broadcast %cst_121 : f32 to vector<8x1xf32>
    %303 = arith.addf %299, %302 : vector<8x1xf32>
    %304 = math.rsqrt %303 : vector<8x1xf32>
    %305 = vector.broadcast %304 : vector<8x1xf32> to vector<8x32xf32>
    %306 = arith.mulf %301, %305 : vector<8x32xf32>
    %307 = vector.broadcast %285 : vector<1x32xf32> to vector<8x32xf32>
    %308 = arith.mulf %306, %307 : vector<8x32xf32>
    %309 = vector.broadcast %286 : vector<1x32xf32> to vector<8x32xf32>
    %310 = arith.addf %308, %309 : vector<8x32xf32>
    %cst_122 = arith.constant 0.000000e+00 : f32
    %311 = vector.broadcast %cst_122 : f32 to vector<8x32xf32>
    %312 = arith.cmpf oge, %310, %311 : vector<8x32xf32>
    %cst_123 = arith.constant 1.000000e-01 : f32
    %313 = vector.broadcast %cst_123 : f32 to vector<8x32xf32>
    %314 = arith.mulf %313, %310 : vector<8x32xf32>
    %315 = arith.select %312, %310, %314 : vector<8x32xi1>, vector<8x32xf32>
    %c0_124 = arith.constant 0 : index
    %c0_125 = arith.constant 0 : index
    %316 = vector.load %arg13[%c0_124, %c0_125] : memref<32x4xf32, #tpu.memory_space<vmem>>, vector<32x4xf32>
    %cst_126 = arith.constant dense<0.000000e+00> : vector<8x4xf32>
    %317 = tpu.matmul %315, %316, %cst_126 {dimension_numbers = #tpu.dot_dimension_numbers<[1], [0], [0], [1], [0, 0, 1, 1], [], []>} : vector<8x32xf32>, vector<32x4xf32>, vector<8x4xf32> -> vector<8x4xf32>
    %c28 = arith.constant 28 : index
    %c0_127 = arith.constant 0 : index
    %318 = vector.load %arg14[%c28, %c0_127] : memref<29x32xf32, #tpu.memory_space<vmem>>, vector<1x4xf32>
    %319 = vector.broadcast %318 : vector<1x4xf32> to vector<8x4xf32>
    %320 = arith.addf %317, %319 : vector<8x4xf32>
    %c0_128 = arith.constant 0 : index
    %c0_129 = arith.constant 0 : index
    %321 = vector.load %arg15[%c0_128, %c0_129] : memref<8x8xf32, #tpu.memory_space<vmem>>, vector<8x4xf32>
    tpu.vector_store %arg15[%c0_128, %c0_129], %108 {strides = array<i32>} : memref<8x8xf32, #tpu.memory_space<vmem>>, vector<8x4xf32>,
    %c0_130 = arith.constant 0 : index
    %c4_131 = arith.constant 4 : index
    %322 = vector.load %arg15[%c0_130, %c4_131] : memref<8x8xf32, #tpu.memory_space<vmem>>, vector<8x4xf32>
    tpu.vector_store %arg15[%c0_130, %c4_131], %320 {strides = array<i32>} : memref<8x8xf32, #tpu.memory_space<vmem>>, vector<8x4xf32>,
    %c0_132 = arith.constant 0 : index
    %c0_133 = arith.constant 0 : index
    %323 = vector.load %arg16[%c0_132, %c0_133] : memref<8x32xf32, #tpu.memory_space<vmem>>, vector<8x32xf32>
    tpu.vector_store %arg16[%c0_132, %c0_133], %315 {strides = array<i32>} : memref<8x32xf32, #tpu.memory_space<vmem>>, vector<8x32xf32>,
    return
  }
  func.func @transform_0(%arg0: i32) -> (i32, i32) {
    %c0_i32 = arith.constant 0 : i32
    %c0_i32_0 = arith.constant 0 : i32
    return %arg0, %c0_i32 : i32, i32
  }
  func.func @transform_1(%arg0: i32) -> (i32, i32) {
    %c0_i32 = arith.constant 0 : i32
    %c0_i32_0 = arith.constant 0 : i32
    %c0_i32_1 = arith.constant 0 : i32
    return %c0_i32, %c0_i32_0 : i32, i32
  }
  func.func @transform_2(%arg0: i32) -> (i32, i32) {
    %c0_i32 = arith.constant 0 : i32
    %c0_i32_0 = arith.constant 0 : i32
    %c0_i32_1 = arith.constant 0 : i32
    return %c0_i32, %c0_i32_0 : i32, i32
  }
  func.func @transform_3(%arg0: i32) -> (i32, i32) {
    %c0_i32 = arith.constant 0 : i32
    %c0_i32_0 = arith.constant 0 : i32
    %c0_i32_1 = arith.constant 0 : i32
    return %c0_i32, %c0_i32_0 : i32, i32
  }
  func.func @transform_4(%arg0: i32) -> (i32, i32) {
    %c0_i32 = arith.constant 0 : i32
    %c0_i32_0 = arith.constant 0 : i32
    %c0_i32_1 = arith.constant 0 : i32
    return %c0_i32, %c0_i32_0 : i32, i32
  }
  func.func @transform_5(%arg0: i32) -> (i32, i32) {
    %c0_i32 = arith.constant 0 : i32
    %c0_i32_0 = arith.constant 0 : i32
    %c0_i32_1 = arith.constant 0 : i32
    return %c0_i32, %c0_i32_0 : i32, i32
  }
  func.func @transform_6(%arg0: i32) -> (i32, i32) {
    %c0_i32 = arith.constant 0 : i32
    %c0_i32_0 = arith.constant 0 : i32
    %c0_i32_1 = arith.constant 0 : i32
    return %c0_i32, %c0_i32_0 : i32, i32
  }
  func.func @transform_7(%arg0: i32) -> (i32, i32) {
    %c0_i32 = arith.constant 0 : i32
    %c0_i32_0 = arith.constant 0 : i32
    %c0_i32_1 = arith.constant 0 : i32
    return %c0_i32, %c0_i32_0 : i32, i32
  }
  func.func @transform_8(%arg0: i32) -> (i32, i32) {
    %c0_i32 = arith.constant 0 : i32
    %c0_i32_0 = arith.constant 0 : i32
    %c0_i32_1 = arith.constant 0 : i32
    return %c0_i32, %c0_i32_0 : i32, i32
  }
  func.func @transform_9(%arg0: i32) -> (i32, i32) {
    %c0_i32 = arith.constant 0 : i32
    %c0_i32_0 = arith.constant 0 : i32
    %c0_i32_1 = arith.constant 0 : i32
    return %c0_i32, %c0_i32_0 : i32, i32
  }
  func.func @transform_10(%arg0: i32) -> (i32, i32) {
    %c0_i32 = arith.constant 0 : i32
    %c0_i32_0 = arith.constant 0 : i32
    %c0_i32_1 = arith.constant 0 : i32
    return %c0_i32, %c0_i32_0 : i32, i32
  }
  func.func @transform_11(%arg0: i32) -> (i32, i32) {
    %c0_i32 = arith.constant 0 : i32
    %c0_i32_0 = arith.constant 0 : i32
    %c0_i32_1 = arith.constant 0 : i32
    return %c0_i32, %c0_i32_0 : i32, i32
  }
  func.func @transform_12(%arg0: i32) -> (i32, i32) {
    %c0_i32 = arith.constant 0 : i32
    %c0_i32_0 = arith.constant 0 : i32
    %c0_i32_1 = arith.constant 0 : i32
    return %c0_i32, %c0_i32_0 : i32, i32
  }
  func.func @transform_13(%arg0: i32) -> (i32, i32) {
    %c0_i32 = arith.constant 0 : i32
    %c0_i32_0 = arith.constant 0 : i32
    %c0_i32_1 = arith.constant 0 : i32
    return %c0_i32, %c0_i32_0 : i32, i32
  }
  func.func @transform_14(%arg0: i32) -> (i32, i32) {
    %c0_i32 = arith.constant 0 : i32
    %c0_i32_0 = arith.constant 0 : i32
    return %arg0, %c0_i32 : i32, i32
  }
  func.func @transform_15(%arg0: i32) -> (i32, i32) {
    %c0_i32 = arith.constant 0 : i32
    %c0_i32_0 = arith.constant 0 : i32
    return %arg0, %c0_i32 : i32, i32
  }
}

</mosaic_0001>

<bundles_post_ra>
// kernel: encode_policy_apply.1
= control target key start
LH: loop header
LB: loop body
LE: loop exit
PB: predicated region body
PF: predicated region fallthrough
CT: control target
= control target key end

     0   :  { %21 = vsyncpa [#allocation3], 0  ;;  %s1229_s0 = inlined_call_operand.hbm [shape: f32[8,32], index: 0, kind: input, shape index: {}]   ;;  %s1230_s1 = inlined_call_operand.vmem [shape: f32[32,32], index: 1, kind: input, shape index: {}]   ;;  %s1231_s2 = inlined_call_operand.vmem [shape: f32[32,32], index: 2, kind: input, shape index: {}]   ;;  %s1232_s3 = inlined_call_operand.vmem [shape: f32[32,32], index: 3, kind: input, shape index: {}]   ;;  %s1233_s4 = inlined_call_operand.vmem [shape: f32[32,4], index: 4, kind: input, shape index: {}]   ;;  %s1234_s5 = inlined_call_operand.vmem [shape: f32[32,16], index: 5, kind: input, shape index: {}]   ;;  %s1235_s6 = inlined_call_operand.vmem [shape: f32[16,8], index: 6, kind: input, shape index: {}]   ;;  %s1236_s7 = inlined_call_operand.vmem [shape: f32[8,1], index: 7, kind: input, shape index: {}]   ;;  %s1237_s8 = inlined_call_operand.vmem [shape: f32[24,32], index: 8, kind: input, shape index: {}]   ;;  %s1238_s9 = inlined_call_operand.vmem [shape: f32[1,32], index: 9, kind: input, shape index: {}]   ;;  %s1239_s10 = inlined_call_operand.hbm [shape: f32[32,32], index: 10, kind: input, shape index: {}]   ;;  %s1240_s11 = inlined_call_operand.hbm [shape: f32[32,32], index: 11, kind: input, shape index: {}]   ;;  %s1241_s12 = inlined_call_operand.vmem [shape: f32[32,4], index: 12, kind: input, shape index: {}]   ;;  %s1242_s13 = inlined_call_operand.hbm [shape: f32[29,32], index: 13, kind: input, shape index: {}]   ;;  %s1243_s14 = inlined_call_operand.hbm [shape: f32[8,8], index: 14, kind: output, shape index: {0}]   ;;  %s1244_s15 = inlined_call_operand.hbm [shape: f32[8,32], index: 15, kind: output, shape index: {1}]  }
   0x1   :  { %22 = vsyncpa [#allocation6], 0 }
   0x2   :  { %23 = vsyncpa [#allocation9], 0 }
   0x3   :  { %24 = vsyncpa [#allocation4], 0  ;;  %s59_s20 = sshll.u32 %s1239_s10, 4  ;;  %s60_s20 = int_to_ptr.hbm [resolvable:$true] %s59_s20 }
   0x4   :  { %25 = vsyncpa [#allocation12], 0  ;;  %s997_s21 = smov [#allocation5]   ;;  %s31_s25 = sshll.u32 %s1229_s0, 4  ;;  %s32_s25 = int_to_ptr.hbm [resolvable:$true] %s31_s25 }
   0x5   :  { %s61_s22 = sshll.u32 %s997_s21, 4  ;;  %s998_s26 = smov 128   ;;  %s62_s22 = int_to_ptr.vmem [resolvable:$true] %s61_s22 }
   0x6   :  { %s999_s27 = smov 8   ;;  %s1000_s28 = smov [#allocation2]  }
   0x7   :  { %67 = dma.hbm_to_vmem [thread:$0]  %s60_s20, 512, %s62_s22, [#allocation6], %s998_s26, %s998_s26, %s999_s27  }
   0x8   :  { %s33_s29 = sshll.u32 %s1000_s28, 4  ;;  %s72_s17 = sshll.u32 %s1240_s11, 4  ;;  %s34_s29 = int_to_ptr.vmem [resolvable:$true] %s33_s29  ;;  %s73_s17 = int_to_ptr.hbm [resolvable:$true] %s72_s17 }
   0x9   :  { %36 = dma.hbm_to_vmem [thread:$0]  %s32_s25, 128, %s34_s29, [#allocation3]  }
   0xa   :  { %s87_s19 = sshll.u32 %s1242_s13, 4  ;;  %s1001_s21 = smov [#allocation7]   ;;  %s88_s19 = int_to_ptr.hbm [resolvable:$true] %s87_s19 }
   0xb   :  { %s74_s23 = sshll.u32 %s1001_s21, 4  ;;  %s1002_s0 = smov [#allocation8]   ;;  %s75_s23 = int_to_ptr.vmem [resolvable:$true] %s74_s23 }
   0xc   :  { %80 = dma.hbm_to_vmem [thread:$0]  %s73_s17, 512, %s75_s23, [#allocation6], %s998_s26, %s998_s26, %s999_s27  }
   0xd   :  { %s89_s20 = sshll.u32 %s1002_s0, 4  ;;  %s90_s20 = int_to_ptr.vmem [resolvable:$true] %s89_s20 }
   0xe   :  { %95 = dma.hbm_to_vmem [thread:$0]  %s88_s19, 512, %s90_s20, [#allocation9], %s998_s26, %s998_s26, %s999_s27  }
   0xf   :  { %987 = dma.done.wait [#allocation3], 128  }
  0x10   :  { %988 = vsyncadd [#allocation3], 4294967168 }
  0x11   :  { %989 = dma.done.wait [#allocation6], 1024  }
  0x12   :  { %990 = vsyncadd [#allocation6], 4294966272 }
  0x13   :  { %991 = dma.done.wait [#allocation9], 512  }
  0x14   :  { %992 = vsyncadd [#allocation9], 4294966784  ;;  %v116_v0 = vld [vmem:[%s1230_s1 + $0x18] sm:$0xff]  ;;  %v115_v1 = vld [vmem:[%s1230_s1 + $0x10] sm:$0xff]  ;;  %vm121_vm0 = vcmask 261120   ;;  %vm357_vm13 = vcmask 130048  }
  0x15   :  { %137 = vmatpush.msra.mxu0 %v116_v0  ;;  %v114_v2 = vld [vmem:[%s1230_s1 + $0x8] sm:$0xff]  ;;  %v113_v3 = vld [vmem:[%s1230_s1] sm:$0xff]  ;;  %v179_v12 = vld [vmem:[%s1231_s2 + $0x18] sm:$0xff]  ;;  %vm728_vm14 = vcmask 31744   ;;  %s755_s19 = sshll.u32 %s1244_s15, 4  ;;  %s1006_s21 = smov [#allocation10]   ;;  %s756_s19 = int_to_ptr.hbm [resolvable:$true] %s755_s19 }
  0x16   :  { %v1111_v4 = vld [vmem:[#allocation2] sm:$0xff]  ;;  %v795_v5 = vld [vmem:[#allocation8] ss:$0 sm:$0xff]  ;;  %v178_v13 = vld [vmem:[%s1231_s2 + $0x10] sm:$0xff]  ;;  %199 = vmatpush.msra.mxu1 %v179_v12  ;;  %s744_s0 = sshll.u32 %s1243_s14, 4  ;;  %s745_s0 = int_to_ptr.hbm [resolvable:$true] %s744_s0 }
  0x17   :  { %138 = vmatpush.msra.mxu0 %v115_v1  ;;  %v177_v14 = vld [vmem:[%s1231_s2 + $0x8] sm:$0xff]  ;;  %v176_v15 = vld [vmem:[%s1231_s2] sm:$0xff]  ;;  %v241_v44 = vld [vmem:[%s1232_s3 + $0x18] sm:$0xff]  ;;  %s1005_s2 = smov 4  }
  0x18   :  { %200 = vmatpush.msra.mxu1 %v178_v13  ;;  %v796_v29 = vld [vmem:[#allocation8 + $0x1] ss:$0 sm:$0xff]  ;;  %v797_v32 = vld [vmem:[#allocation8 + $0x2] ss:$0 sm:$0xff]  ;;  %v798_v37 = vld [vmem:[#allocation8 + $0x3] ss:$0 sm:$0xff]  ;;  %261 = vmatpush.msra.mxu2 %v241_v44 }
  0x19   :  { %139 = vmatpush.msra.mxu0 %v114_v2  ;;  %v240_v45 = vld [vmem:[%s1232_s3 + $0x10] sm:$0xff]  ;;  %v239_v46 = vld [vmem:[%s1232_s3 + $0x8] sm:$0xff]  ;;  %v238_v47 = vld [vmem:[%s1232_s3] sm:$0xff] }
  0x1a   :  { %201 = vmatpush.msra.mxu1 %v177_v14  ;;  %262 = vmatpush.msra.mxu2 %v240_v45  ;;  %v799_v61 = vld [vmem:[#allocation8 + $0x4] ss:$0 sm:$0xff]  ;;  %v800_v0 = vld [vmem:[#allocation8 + $0x5] ss:$0 sm:$0xff]  ;;  %v332_v13 = vld [vmem:[%s1234_s5 + $0x18] sm:$0xff] }
  0x1b   :  { %140 = vmatpush.msra.mxu0 %v113_v3  ;;  %v303_v14 = vld [vmem:[%s1233_s4 + $0x18] sm:$0xff] }
  0x1c   :  { %772 = vmatmul.msk.f32.vlgmr.msra.gmra.mxu0 %vm121_vm0, %v1111_v4  ;;  %202 = vmatpush.msra.mxu1 %v176_v15  ;;  %v331_v15 = vld [vmem:[%s1234_s5 + $0x10] sm:$0xff] }
  0x1d   :  { %263 = vmatpush.msra.mxu2 %v239_v46  ;;  %349 = vmatpush.msrb.mxu0 %v332_v13 }
  0x1e   :  { %321 = vmatpush.msra.mxu3 %v303_v14 }
  0x1f   :  { %264 = vmatpush.msra.mxu2 %v238_v47  ;;  %350 = vmatpush.msrb.mxu0 %v331_v15  ;;  %v805_v47 = vld [vmem:[#allocation8 + $0x9] ss:$0 sm:$0xff] }
  0x99   :  { %v142_v6 = vpop.f32.mrf.mxu0 }
  0x9a   :  { %v143_v7 = vadd.f32 %v795_v5, %v142_v6  ;;  %v801_v6 = vld [vmem:[#allocation8 + $0x6] ss:$0 sm:$0xff] }
  0x9c   :  { %v145_v8 = vsel %vm121_vm0, %v143_v7, 0.0  ;;  %v148_v9 = vmul.f32 %v143_v7, %v143_v7 }
  0x9d   :  { %146 = vadd.xlane.f32.xlu0 %v145_v8 }
  0x9e   :  { %v149_v10 = vsel %vm121_vm0, %v148_v9, 0.0 }
  0xa5   :  { %150 = vadd.xlane.f32.xlu0 %v149_v10 }
 0x110   :  { %v147_v11 = vpop.xlane.xlu0 %146 }
 0x111   :  { %v152_v16 = vmul.f32 0.03125, %v147_v11 }
 0x113   :  { %v154_v18 = vmul.f32 %v152_v16, %v152_v16  ;;  %v156_v28 = vsub.f32 %v143_v7, %v152_v16  ;;  %v302_v16 = vld [vmem:[%s1233_s4 + $0x10] sm:$0xff] }
 0x114   :  { %322 = vmatpush.msra.mxu3 %v302_v16 }
 0x118   :  { %v151_v17 = vpop.xlane.xlu0 %150 }
 0x119   :  { %v153_v19 = vmul.f32 0.03125, %v151_v17  ;;  %v330_v17 = vld [vmem:[%s1234_s5 + $0x8] sm:$0xff] }
 0x11a   :  { %351 = vmatpush.msrb.mxu0 %v330_v17 }
 0x11b   :  { %v155_v20 = vsub.f32 %v153_v19, %v154_v18  ;;  %v301_v18 = vld [vmem:[%s1233_s4 + $0x8] sm:$0xff]  ;;  %v329_v19 = vld [vmem:[%s1234_s5] sm:$0xff] }
 0x11c   :  { %323 = vmatpush.msra.mxu3 %v301_v18  ;;  %352 = vmatpush.msrb.mxu0 %v329_v19  ;;  %v450_v18 = vld [vmem:[%s1236_s7] sm:$0xff] }
 0x11d   :  { %v157_v21 = vadd.f32 1e-05, %v155_v20  ;;  %v300_v20 = vld [vmem:[%s1233_s4] sm:$0xff]  ;;  %473 = vmatpush.msrb.mxu2 %v450_v18  ;;  %s742_s4 = sshll.u32 %s1006_s21, 4  ;;  %s743_s4 = int_to_ptr.vmem [resolvable:$true] %s742_s4 }
 0x11e   :  { %324 = vmatpush.msra.mxu3 %v300_v20 }
 0x11f   :  { %825 = vrsqrt.f32 %v157_v21  ;;  %vm164_vm2 = vweird.f32 %v157_v21 }
 0x125   :  { %v826_v22 = vpop.eup %825 }
 0x126   :  { %v159_v23 = vmul.f32 %v826_v22, %v157_v21  ;;  %vm165_vm1 = vweird.f32 %v826_v22 }
 0x127   :  { %vm166_vm3 = vmor %vm164_vm2, %vm165_vm1 }
 0x128   :  { %v160_v24 = vmul.f32 %v826_v22, %v159_v23 }
 0x12a   :  { %v161_v25 = vmul.f32 0.5, %v160_v24 }
 0x12c   :  { %v162_v26 = vsub.f32 1.5, %v161_v25 }
 0x12e   :  { %v163_v27 = vmul.f32 %v826_v22, %v162_v26 }
 0x130   :  { %v167_v30 = vsel %vm166_vm3, %v826_v22, %v163_v27 }
 0x131   :  { %v168_v31 = vmul.f32 %v167_v30, %v156_v28 }
 0x133   :  { %v170_v33 = vmul.f32 %v796_v29, %v168_v31 }
 0x135   :  { %v172_v34 = vadd.f32 %v797_v32, %v170_v33 }
 0x137   :  { %vm173_vm4 = vcmp.ge.f32.partialorder %v172_v34, 0.0  ;;  %v174_v35 = vmul.f32 0.1, %v172_v34 }
 0x139   :  { %v175_v36 = vsel %vm173_vm4, %v172_v34, %v174_v35  ;;  %v802_v34 = vld [vmem:[#allocation8 + $0x7] ss:$0 sm:$0xff]  ;;  %vm418_vm4 = vcmask 64512  }
 0x13a   :  { %773 = vmatmul.msk.f32.vlgmr.msra.gmra.mxu1 %vm121_vm0, %v175_v36 }
 0x1b7   :  { %v204_v38 = vpop.f32.mrf.mxu1 }
 0x1b8   :  { %v205_v39 = vadd.f32 %v798_v37, %v204_v38  ;;  %v803_v37 = vld [vmem:[#allocation8 + $0x8] ss:$0 sm:$0xff] }
 0x1ba   :  { %v207_v40 = vsel %vm121_vm0, %v205_v39, 0.0  ;;  %v210_v41 = vmul.f32 %v205_v39, %v205_v39 }
 0x1bb   :  { %208 = vadd.xlane.f32.xlu1 %v207_v40 }
 0x1bc   :  { %v211_v42 = vsel %vm121_vm0, %v210_v41, 0.0 }
 0x1c3   :  { %212 = vadd.xlane.f32.xlu1 %v211_v42  ;;  %v804_v42 = vld [vmem:[#allocation8 + $0xa] ss:$0 sm:$0xff] }
 0x22e   :  { %v209_v43 = vpop.xlane.xlu1 %208 }
 0x22f   :  { %v214_v48 = vmul.f32 0.03125, %v209_v43 }
 0x231   :  { %v216_v50 = vmul.f32 %v214_v48, %v214_v48  ;;  %v218_v60 = vsub.f32 %v205_v39, %v214_v48 }
 0x236   :  { %v213_v49 = vpop.xlane.xlu1 %212 }
 0x237   :  { %v215_v51 = vmul.f32 0.03125, %v213_v49 }
 0x239   :  { %v217_v52 = vsub.f32 %v215_v51, %v216_v50  ;;  %v390_v51 = vld [vmem:[%s1235_s6 + $0x8] sm:$0xff] }
 0x23a   :  { %412 = vmatpush.msrb.mxu1 %v390_v51 }
 0x23b   :  { %v219_v53 = vadd.f32 1e-05, %v217_v52  ;;  %v389_v52 = vld [vmem:[%s1235_s6] sm:$0xff] }
 0x23c   :  { %413 = vmatpush.msrb.mxu1 %v389_v52 }
 0x23d   :  { %827 = vrsqrt.f32 %v219_v53  ;;  %vm226_vm6 = vweird.f32 %v219_v53 }
 0x243   :  { %v828_v54 = vpop.eup %827 }
 0x244   :  { %v221_v55 = vmul.f32 %v828_v54, %v219_v53  ;;  %vm227_vm5 = vweird.f32 %v828_v54 }
 0x245   :  { %vm228_vm7 = vmor %vm226_vm6, %vm227_vm5 }
 0x246   :  { %v222_v56 = vmul.f32 %v828_v54, %v221_v55 }
 0x248   :  { %v223_v57 = vmul.f32 0.5, %v222_v56 }
 0x24a   :  { %v224_v58 = vsub.f32 1.5, %v223_v57 }
 0x24c   :  { %v225_v59 = vmul.f32 %v828_v54, %v224_v58 }
 0x24e   :  { %v229_v62 = vsel %vm228_vm7, %v828_v54, %v225_v59 }
 0x24f   :  { %v230_v63 = vmul.f32 %v229_v62, %v218_v60 }
 0x251   :  { %v232_v1 = vmul.f32 %v799_v61, %v230_v63 }
 0x253   :  { %v234_v2 = vadd.f32 %v800_v0, %v232_v1 }
 0x255   :  { %vm235_vm8 = vcmp.ge.f32.partialorder %v234_v2, 0.0  ;;  %v236_v3 = vmul.f32 0.1, %v234_v2 }
 0x257   :  { %v237_v5 = vsel %vm235_vm8, %v234_v2, %v236_v3  ;;  %v806_v3 = vld [vmem:[#allocation8 + $0xb] ss:$0 sm:$0xff] }
 0x258   :  { %774 = vmatmul.msk.f32.vlgmr.msra.gmra.mxu2 %vm121_vm0, %v237_v5 }
 0x2db   :  { %v266_v7 = vpop.f32.mrf.mxu2 }
 0x2dc   :  { %v267_v8 = vadd.f32 %v801_v6, %v266_v7  ;;  %v807_v7 = vld [vmem:[#allocation8 + $0xc] ss:$0 sm:$0xff] }
 0x2de   :  { %v269_v9 = vsel %vm121_vm0, %v267_v8, 0.0  ;;  %v272_v10 = vmul.f32 %v267_v8, %v267_v8 }
 0x2df   :  { %270 = vadd.xlane.f32.xlu2 %v269_v9 }
 0x2e0   :  { %v273_v11 = vsel %vm121_vm0, %v272_v10, 0.0 }
 0x2e7   :  { %274 = vadd.xlane.f32.xlu2 %v273_v11 }
 0x352   :  { %v271_v12 = vpop.xlane.xlu2 %270 }
 0x353   :  { %v276_v21 = vmul.f32 0.03125, %v271_v12  ;;  %v808_v12 = vld [vmem:[#allocation8 + $0xd] ss:$0 sm:$0xff] }
 0x355   :  { %v278_v23 = vmul.f32 %v276_v21, %v276_v21  ;;  %v280_v33 = vsub.f32 %v267_v8, %v276_v21 }
 0x35a   :  { %v275_v22 = vpop.xlane.xlu2 %274 }
 0x35b   :  { %v277_v24 = vmul.f32 0.03125, %v275_v22 }
 0x35d   :  { %v279_v25 = vsub.f32 %v277_v24, %v278_v23 }
 0x35f   :  { %v281_v26 = vadd.f32 1e-05, %v279_v25 }
 0x361   :  { %829 = vrsqrt.f32 %v281_v26  ;;  %vm288_vm10 = vweird.f32 %v281_v26 }
 0x367   :  { %v830_v27 = vpop.eup %829 }
 0x368   :  { %v283_v28 = vmul.f32 %v830_v27, %v281_v26  ;;  %vm289_vm9 = vweird.f32 %v830_v27 }
 0x369   :  { %vm290_vm11 = vmor %vm288_vm10, %vm289_vm9  ;;  %vm516_vm9 = vcmask 195584  }
 0x36a   :  { %v284_v29 = vmul.f32 %v830_v27, %v283_v28 }
 0x36c   :  { %v285_v30 = vmul.f32 0.5, %v284_v29 }
 0x36e   :  { %v286_v31 = vsub.f32 1.5, %v285_v30 }
 0x370   :  { %v287_v32 = vmul.f32 %v830_v27, %v286_v31 }
 0x372   :  { %v291_v35 = vsel %vm290_vm11, %v830_v27, %v287_v32 }
 0x373   :  { %v292_v36 = vmul.f32 %v291_v35, %v280_v33  ;;  %v809_v33 = vld [vmem:[#allocation8 + $0xe] ss:$0 sm:$0xff] }
 0x375   :  { %v294_v38 = vmul.f32 %v802_v34, %v292_v36  ;;  %v810_v36 = vld [vmem:[#allocation8 + $0xf] ss:$0 sm:$0xff] }
 0x377   :  { %v296_v39 = vadd.f32 %v803_v37, %v294_v38 }
 0x379   :  { %vm297_vm12 = vcmp.ge.f32.partialorder %v296_v39, 0.0  ;;  %v298_v40 = vmul.f32 0.1, %v296_v39 }
 0x37b   :  { %v299_v41 = vsel %vm297_vm12, %v296_v39, %v298_v40 }
 0x37c   :  { %775 = vmatmul.msk.f32.vlgmr.msra.gmra.mxu3 %vm121_vm0, %v299_v41  ;;  %776 = vmatmul.msk.f32.vlgmr.msrb.gmra.mxu0 %vm121_vm0, %v299_v41  ;;  %v505_v41 = vld [vmem:[%s1237_s8 + $0x10] sm:$0xff] }
 0x37d   :  { %532 = vmatpush.msrb.mxu3 %v505_v41 }
 0x3f9   :  { %v354_v43 = vpop.f32.mrf.mxu0 }
 0x3fa   :  { %v355_v44 = vadd.f32 %v804_v42, %v354_v43  ;;  %v504_v42 = vld [vmem:[%s1237_s8 + $0x8] sm:$0xff]  ;;  %v503_v43 = vld [vmem:[%s1237_s8] sm:$0xff] }
 0x3fb   :  { %533 = vmatpush.msrb.mxu3 %v504_v42 }
 0x3fc   :  { %v358_v45 = vsel %vm357_vm13, %v355_v44, 0.0  ;;  %v361_v46 = vmul.f32 %v355_v44, %v355_v44 }
 0x3fd   :  { %359 = vadd.xlane.f32.xlu0 %v358_v45  ;;  %534 = vmatpush.msrb.mxu3 %v503_v43  ;;  %v1003_v45 = vmov 0  }
 0x3fe   :  { %v362_v48 = vsel %vm357_vm13, %v361_v46, 0.0  ;;  %779 = vmatmul.msk.f32.vlgmr.msrb.gmra.mxu3 %vm516_vm9, %v1111_v4  ;;  %793 = vset.pattern.permute.xlu1 %v1003_v45  ;;  %v812_v4 = vld [vmem:[#allocation8 + $0x11] ss:$0 sm:$0xff] }
 0x3ff   :  { %363 = vadd.xlane.f32.xlu1 %v362_v48  ;;  %v326_v49 = vpop.f32.mrf.mxu3  ;;  %794 = vset.pattern.permute.xlu0 %v1003_v45  ;;  %v639_v45 = vld [vmem:[#allocation7 + $0x10] sm:$0xff] }
 0x400   :  { %v327_v50 = vadd.f32 %v805_v47, %v326_v49 }
 0x402   :  { %729 = vst.msk [vmem:[#allocation10] sm:$0xff] %vm728_vm14, %v327_v50 }
 0x470   :  { %v360_v53 = vpop.xlane.xlu0 %359 }
 0x471   :  { %v365_v54 = vmul.f32 0.0625, %v360_v53 }
 0x472   :  { %v364_v55 = vpop.xlane.xlu1 %363 }
 0x473   :  { %v367_v56 = vmul.f32 %v365_v54, %v365_v54  ;;  %v366_v57 = vmul.f32 0.0625, %v364_v55  ;;  %v369_v2 = vsub.f32 %v355_v44, %v365_v54  ;;  %v811_v44 = vld [vmem:[#allocation8 + $0x10] ss:$0 sm:$0xff] }
 0x475   :  { %v368_v58 = vsub.f32 %v366_v57, %v367_v56 }
 0x477   :  { %v370_v59 = vadd.f32 1e-05, %v368_v58 }
 0x479   :  { %831 = vrsqrt.f32 %v370_v59  ;;  %vm377_vm1 = vweird.f32 %v370_v59 }
 0x47f   :  { %v832_v60 = vpop.eup %831 }
 0x480   :  { %v372_v61 = vmul.f32 %v832_v60, %v370_v59  ;;  %vm378_vm15 = vweird.f32 %v832_v60 }
 0x481   :  { %vm379_vm2 = vmor %vm377_vm1, %vm378_vm15 }
 0x482   :  { %v373_v62 = vmul.f32 %v832_v60, %v372_v61 }
 0x484   :  { %v374_v63 = vmul.f32 0.5, %v373_v62 }
 0x486   :  { %v375_v0 = vsub.f32 1.5, %v374_v63 }
 0x488   :  { %v376_v1 = vmul.f32 %v832_v60, %v375_v0 }
 0x48a   :  { %v380_v5 = vsel %vm379_vm2, %v832_v60, %v376_v1  ;;  %v813_v60 = vld [vmem:[#allocation8 + $0x12] ss:$0 sm:$0xff]  ;;  %v814_v1 = vld [vmem:[%s1238_s9] ss:$0 sm:$0xff] }
 0x48b   :  { %v381_v6 = vmul.f32 %v380_v5, %v369_v2 }
 0x48d   :  { %v383_v8 = vmul.f32 %v806_v3, %v381_v6  ;;  %v536_v3 = vpop.f32.mrf.mxu3  ;;  %v815_v6 = vld [vmem:[#allocation8 + $0x13] ss:$0 sm:$0xff] }
 0x48f   :  { %v385_v9 = vadd.f32 %v807_v7, %v383_v8 }
 0x491   :  { %vm386_vm3 = vcmp.ge.f32.partialorder %v385_v9, 0.0  ;;  %v387_v10 = vmul.f32 0.1, %v385_v9 }
 0x493   :  { %v388_v11 = vsel %vm386_vm3, %v385_v9, %v387_v10 }
 0x494   :  { %777 = vmatmul.msk.f32.vlgmr.msrb.gmra.mxu1 %vm357_vm13, %v388_v11 }
 0x511   :  { %v415_v13 = vpop.f32.mrf.mxu1 }
 0x512   :  { %v416_v14 = vadd.f32 %v808_v12, %v415_v13  ;;  %v578_v12 = vld [vmem:[#allocation5 + $0x18] sm:$0xff]  ;;  %v577_v13 = vld [vmem:[#allocation5 + $0x10] sm:$0xff] }
 0x513   :  { %598 = vmatpush.msra.mxu0 %v578_v12  ;;  %v702_v12 = vld [vmem:[%s1241_s12 + $0x18] sm:$0xff] }
 0x514   :  { %v419_v15 = vsel %vm418_vm4, %v416_v14, 0.0  ;;  %v422_v16 = vmul.f32 %v416_v14, %v416_v14  ;;  %720 = vmatpush.msra.mxu2 %v702_v12 }
 0x515   :  { %420 = vadd.xlane.f32.xlu2 %v419_v15  ;;  %599 = vmatpush.msra.mxu0 %v577_v13  ;;  %v575_v15 = vld [vmem:[#allocation5] sm:$0xff]  ;;  %v701_v13 = vld [vmem:[%s1241_s12 + $0x10] sm:$0xff] }
 0x516   :  { %v423_v17 = vsel %vm418_vm4, %v422_v16, 0.0  ;;  %721 = vmatpush.msra.mxu2 %v701_v13 }
 0x517   :  { %424 = vadd.xlane.f32.xlu0 %v423_v17 }
 0x588   :  { %v421_v19 = vpop.xlane.xlu2 %420 }
 0x589   :  { %v426_v20 = vmul.f32 0.125, %v421_v19 }
 0x58a   :  { %v425_v21 = vpop.xlane.xlu0 %424 }
 0x58b   :  { %v428_v22 = vmul.f32 %v426_v20, %v426_v20  ;;  %v427_v23 = vmul.f32 0.125, %v425_v21  ;;  %v430_v32 = vsub.f32 %v416_v14, %v426_v20  ;;  %v576_v14 = vld [vmem:[#allocation5 + $0x8] sm:$0xff] }
 0x58c   :  { %600 = vmatpush.msra.mxu0 %v576_v14  ;;  %v700_v14 = vld [vmem:[%s1241_s12 + $0x8] sm:$0xff] }
 0x58d   :  { %v429_v24 = vsub.f32 %v427_v23, %v428_v22  ;;  %722 = vmatpush.msra.mxu2 %v700_v14 }
 0x58e   :  { %601 = vmatpush.msra.mxu0 %v575_v15  ;;  %v699_v15 = vld [vmem:[%s1241_s12] sm:$0xff]  ;;  %s1004_s12 = smov [#allocation11]  }
 0x58f   :  { %v431_v25 = vadd.f32 1e-05, %v429_v24  ;;  %723 = vmatpush.msra.mxu2 %v699_v15  ;;  %s753_s17 = sshll.u32 %s1004_s12, 4  ;;  %s754_s17 = int_to_ptr.vmem [resolvable:$true] %s753_s17 }
 0x591   :  { %833 = vrsqrt.f32 %v431_v25  ;;  %vm438_vm6 = vweird.f32 %v431_v25 }
 0x597   :  { %v834_v26 = vpop.eup %833 }
 0x598   :  { %v433_v27 = vmul.f32 %v834_v26, %v431_v25  ;;  %vm439_vm5 = vweird.f32 %v834_v26 }
 0x599   :  { %vm440_vm7 = vmor %vm438_vm6, %vm439_vm5 }
 0x59a   :  { %v434_v28 = vmul.f32 %v834_v26, %v433_v27 }
 0x59c   :  { %v435_v29 = vmul.f32 0.5, %v434_v28 }
 0x59e   :  { %v436_v30 = vsub.f32 1.5, %v435_v29 }
 0x5a0   :  { %v437_v31 = vmul.f32 %v834_v26, %v436_v30  ;;  %v816_v30 = vld [vmem:[#allocation8 + $0x14] ss:$0 sm:$0xff] }
 0x5a2   :  { %v441_v34 = vsel %vm440_vm7, %v834_v26, %v437_v31 }
 0x5a3   :  { %v442_v35 = vmul.f32 %v441_v34, %v430_v32 }
 0x5a5   :  { %v444_v37 = vmul.f32 %v809_v33, %v442_v35  ;;  %v817_v33 = vld [vmem:[#allocation8 + $0x15] ss:$0 sm:$0xff] }
 0x5a7   :  { %v446_v38 = vadd.f32 %v810_v36, %v444_v37 }
 0x5a9   :  { %vm447_vm8 = vcmp.ge.f32.partialorder %v446_v38, 0.0  ;;  %v448_v39 = vmul.f32 0.1, %v446_v38 }
 0x5ab   :  { %v449_v40 = vsel %vm447_vm8, %v446_v38, %v448_v39  ;;  %v818_v38 = vld [vmem:[#allocation8 + $0x16] ss:$0 sm:$0xff] }
 0x5ac   :  { %778 = vmatmul.msk.f32.vlgmr.msrb.gmra.mxu2 %vm418_vm4, %v449_v40 }
 0x62f   :  { %v475_v46 = vpop.f32.mrf.mxu2 }
 0x630   :  { %v476_v47 = vadd.f32 %v811_v44, %v475_v46  ;;  %v640_v44 = vld [vmem:[#allocation7 + $0x18] sm:$0xff]  ;;  %v638_v46 = vld [vmem:[#allocation7 + $0x8] sm:$0xff] }
 0x631   :  { %660 = vmatpush.msra.mxu1 %v640_v44 }
 0x632   :  { %v479_v48 = vmul.f32 %v476_v47, %v476_v47  ;;  %v483_v57 = vsub.f32 %v476_v47, %v476_v47  ;;  %v637_v47 = vld [vmem:[#allocation7] sm:$0xff] }
 0x633   :  { %661 = vmatpush.msra.mxu1 %v639_v45 }
 0x634   :  { %v482_v49 = vsub.f32 %v479_v48, %v479_v48 }
 0x635   :  { %662 = vmatpush.msra.mxu1 %v638_v46 }
 0x636   :  { %v484_v50 = vadd.f32 1e-05, %v482_v49 }
 0x637   :  { %663 = vmatpush.msra.mxu1 %v637_v47 }
 0x638   :  { %835 = vrsqrt.f32 %v484_v50  ;;  %vm491_vm11 = vweird.f32 %v484_v50 }
 0x63e   :  { %v836_v51 = vpop.eup %835 }
 0x63f   :  { %v486_v52 = vmul.f32 %v836_v51, %v484_v50  ;;  %vm492_vm10 = vweird.f32 %v836_v51 }
 0x640   :  { %vm493_vm12 = vmor %vm491_vm11, %vm492_vm10 }
 0x641   :  { %v487_v53 = vmul.f32 %v836_v51, %v486_v52 }
 0x643   :  { %v488_v54 = vmul.f32 0.5, %v487_v53 }
 0x645   :  { %v489_v55 = vsub.f32 1.5, %v488_v54 }
 0x647   :  { %v490_v56 = vmul.f32 %v836_v51, %v489_v55 }
 0x649   :  { %v494_v58 = vsel %vm493_vm12, %v836_v51, %v490_v56 }
 0x64a   :  { %v495_v59 = vmul.f32 %v494_v58, %v483_v57 }
 0x64c   :  { %v497_v61 = vmul.f32 %v812_v4, %v495_v59 }
 0x64e   :  { %v499_v62 = vadd.f32 %v813_v60, %v497_v61  ;;  %v819_v61 = vld [vmem:[#allocation8 + $0x17] ss:$0 sm:$0xff] }
 0x650   :  { %vm500_vm13 = vcmp.ge.f32.partialorder %v499_v62, 0.0  ;;  %v501_v63 = vmul.f32 0.1, %v499_v62 }
 0x652   :  { %v502_v0 = vsel %vm500_vm13, %v499_v62, %v501_v63 }
 0x653   :  { %509 = vperm.xlu1 %793, %v502_v0   ;;  %v820_v0 = vld [vmem:[#allocation8 + $0x18] ss:$0 sm:$0xff] }
 0x6c5   :  { %v510_v2 = vpop.permute.xlu1 %509 }
 0x6c6   :  { %v515_v5 = vmul.f32 %v814_v1, %v510_v2 }
 0x6c8   :  { %v537_v7 = vadd.f32 %v536_v3, %v515_v5 }
 0x6ca   :  { %v543_v8 = vadd.f32 %v815_v6, %v537_v7  ;;  %v821_v6 = vld [vmem:[#allocation8 + $0x19] ss:$0 sm:$0xff] }
 0x6cc   :  { %v544_v9 = vsel %vm121_vm0, %v543_v8, 0.0  ;;  %v547_v10 = vmul.f32 %v543_v8, %v543_v8 }
 0x6cd   :  { %545 = vadd.xlane.f32.xlu2 %v544_v9 }
 0x6ce   :  { %v548_v11 = vsel %vm121_vm0, %v547_v10, 0.0 }
 0x6cf   :  { %549 = vadd.xlane.f32.xlu0 %v548_v11 }
 0x740   :  { %v546_v16 = vpop.xlane.xlu2 %545 }
 0x741   :  { %v551_v17 = vmul.f32 0.03125, %v546_v16 }
 0x742   :  { %v550_v18 = vpop.xlane.xlu0 %549 }
 0x743   :  { %v553_v19 = vmul.f32 %v551_v17, %v551_v17  ;;  %v552_v20 = vmul.f32 0.03125, %v550_v18  ;;  %v555_v29 = vsub.f32 %v543_v8, %v551_v17 }
 0x745   :  { %v554_v21 = vsub.f32 %v552_v20, %v553_v19 }
 0x747   :  { %v556_v22 = vadd.f32 1e-05, %v554_v21 }
 0x749   :  { %837 = vrsqrt.f32 %v556_v22  ;;  %vm563_vm15 = vweird.f32 %v556_v22 }
 0x74f   :  { %v838_v23 = vpop.eup %837 }
 0x750   :  { %v558_v24 = vmul.f32 %v838_v23, %v556_v22  ;;  %vm564_vm14 = vweird.f32 %v838_v23 }
 0x751   :  { %vm565_vm1 = vmor %vm563_vm15, %vm564_vm14 }
 0x752   :  { %v559_v25 = vmul.f32 %v838_v23, %v558_v24 }
 0x754   :  { %v560_v26 = vmul.f32 0.5, %v559_v25 }
 0x756   :  { %v561_v27 = vsub.f32 1.5, %v560_v26 }
 0x758   :  { %v562_v28 = vmul.f32 %v838_v23, %v561_v27 }
 0x75a   :  { %v566_v31 = vsel %vm565_vm1, %v838_v23, %v562_v28 }
 0x75b   :  { %v567_v32 = vmul.f32 %v566_v31, %v555_v29 }
 0x75d   :  { %v569_v34 = vmul.f32 %v816_v30, %v567_v32  ;;  %v822_v30 = vld [vmem:[#allocation8 + $0x1a] ss:$0 sm:$0xff] }
 0x75f   :  { %v571_v35 = vadd.f32 %v817_v33, %v569_v34  ;;  %v823_v33 = vld [vmem:[#allocation8 + $0x1b] ss:$0 sm:$0xff] }
 0x761   :  { %vm572_vm2 = vcmp.ge.f32.partialorder %v571_v35, 0.0  ;;  %v573_v36 = vmul.f32 0.1, %v571_v35 }
 0x763   :  { %v574_v37 = vsel %vm572_vm2, %v571_v35, %v573_v36 }
 0x764   :  { %780 = vmatmul.msk.f32.vlgmr.msra.gmra.mxu0 %vm121_vm0, %v574_v37 }
 0x7e1   :  { %v603_v39 = vpop.f32.mrf.mxu0 }
 0x7e2   :  { %v604_v40 = vadd.f32 %v818_v38, %v603_v39  ;;  %v824_v38 = vld [vmem:[#allocation8 + $0x1c] ss:$0 sm:$0xff] }
 0x7e4   :  { %v606_v41 = vsel %vm121_vm0, %v604_v40, 0.0  ;;  %v609_v42 = vmul.f32 %v604_v40, %v604_v40 }
 0x7e5   :  { %607 = vadd.xlane.f32.xlu2 %v606_v41 }
 0x7e6   :  { %v610_v43 = vsel %vm121_vm0, %v609_v42, 0.0 }
 0x7e7   :  { %611 = vadd.xlane.f32.xlu0 %v610_v43 }
 0x858   :  { %v608_v48 = vpop.xlane.xlu2 %607 }
 0x859   :  { %v613_v49 = vmul.f32 0.03125, %v608_v48 }
 0x85a   :  { %v612_v50 = vpop.xlane.xlu0 %611 }
 0x85b   :  { %v615_v51 = vmul.f32 %v613_v49, %v613_v49  ;;  %v614_v52 = vmul.f32 0.03125, %v612_v50  ;;  %v617_v60 = vsub.f32 %v604_v40, %v613_v49 }
 0x85d   :  { %v616_v53 = vsub.f32 %v614_v52, %v615_v51 }
 0x85f   :  { %v618_v54 = vadd.f32 1e-05, %v616_v53 }
 0x861   :  { %839 = vrsqrt.f32 %v618_v54  ;;  %vm625_vm4 = vweird.f32 %v618_v54 }
 0x867   :  { %v840_v55 = vpop.eup %839 }
 0x868   :  { %v620_v56 = vmul.f32 %v840_v55, %v618_v54  ;;  %vm626_vm3 = vweird.f32 %v840_v55 }
 0x869   :  { %vm627_vm5 = vmor %vm625_vm4, %vm626_vm3 }
 0x86a   :  { %v621_v57 = vmul.f32 %v840_v55, %v620_v56 }
 0x86c   :  { %v622_v4 = vmul.f32 0.5, %v621_v57 }
 0x86e   :  { %v623_v58 = vsub.f32 1.5, %v622_v4 }
 0x870   :  { %v624_v59 = vmul.f32 %v840_v55, %v623_v58 }
 0x872   :  { %v628_v62 = vsel %vm627_vm5, %v840_v55, %v624_v59 }
 0x873   :  { %v629_v63 = vmul.f32 %v628_v62, %v617_v60 }
 0x875   :  { %v631_v1 = vmul.f32 %v819_v61, %v629_v63 }
 0x877   :  { %v633_v2 = vadd.f32 %v820_v0, %v631_v1 }
 0x879   :  { %vm634_vm6 = vcmp.ge.f32.partialorder %v633_v2, 0.0  ;;  %v635_v3 = vmul.f32 0.1, %v633_v2 }
 0x87b   :  { %v636_v5 = vsel %vm634_vm6, %v633_v2, %v635_v3 }
 0x87c   :  { %781 = vmatmul.msk.f32.vlgmr.msra.gmra.mxu1 %vm121_vm0, %v636_v5 }
 0x8f9   :  { %v665_v7 = vpop.f32.mrf.mxu1 }
 0x8fa   :  { %v666_v8 = vadd.f32 %v821_v6, %v665_v7 }
 0x8fc   :  { %v668_v9 = vsel %vm121_vm0, %v666_v8, 0.0  ;;  %v671_v10 = vmul.f32 %v666_v8, %v666_v8 }
 0x8fd   :  { %669 = vadd.xlane.f32.xlu2 %v668_v9 }
 0x8fe   :  { %v672_v11 = vsel %vm121_vm0, %v671_v10, 0.0 }
 0x8ff   :  { %673 = vadd.xlane.f32.xlu0 %v672_v11 }
 0x970   :  { %v670_v16 = vpop.xlane.xlu2 %669 }
 0x971   :  { %v675_v17 = vmul.f32 0.03125, %v670_v16 }
 0x972   :  { %v674_v18 = vpop.xlane.xlu0 %673 }
 0x973   :  { %v677_v19 = vmul.f32 %v675_v17, %v675_v17  ;;  %v676_v20 = vmul.f32 0.03125, %v674_v18  ;;  %v679_v29 = vsub.f32 %v666_v8, %v675_v17 }
 0x975   :  { %v678_v21 = vsub.f32 %v676_v20, %v677_v19 }
 0x977   :  { %v680_v22 = vadd.f32 1e-05, %v678_v21 }
 0x979   :  { %841 = vrsqrt.f32 %v680_v22  ;;  %vm687_vm8 = vweird.f32 %v680_v22 }
 0x97f   :  { %v842_v23 = vpop.eup %841 }
 0x980   :  { %v682_v24 = vmul.f32 %v842_v23, %v680_v22  ;;  %vm688_vm7 = vweird.f32 %v842_v23 }
 0x981   :  { %vm689_vm9 = vmor %vm687_vm8, %vm688_vm7 }
 0x982   :  { %v683_v25 = vmul.f32 %v842_v23, %v682_v24 }
 0x984   :  { %v684_v26 = vmul.f32 0.5, %v683_v25 }
 0x986   :  { %v685_v27 = vsub.f32 1.5, %v684_v26 }
 0x988   :  { %v686_v28 = vmul.f32 %v842_v23, %v685_v27 }
 0x98a   :  { %v690_v31 = vsel %vm689_vm9, %v842_v23, %v686_v28 }
 0x98b   :  { %v691_v32 = vmul.f32 %v690_v31, %v679_v29 }
 0x98d   :  { %v693_v34 = vmul.f32 %v822_v30, %v691_v32 }
 0x98f   :  { %v695_v35 = vadd.f32 %v823_v33, %v693_v34 }
 0x991   :  { %vm696_vm10 = vcmp.ge.f32.partialorder %v695_v35, 0.0  ;;  %v697_v36 = vmul.f32 0.1, %v695_v35 }
 0x993   :  { %v698_v37 = vsel %vm696_vm10, %v695_v35, %v697_v36 }
 0x994   :  { %782 = vmatmul.msk.f32.vlgmr.msra.gmra.mxu2 %vm121_vm0, %v698_v37  ;;  %736 = vst.msk [vmem:[#allocation11] sm:$0xff] %vm121_vm0, %v698_v37  ;;  %vm734_vm0 = vcmask 64544  }
 0x995   :  { %758 = dma.vmem_to_hbm [thread:$0]  %s754_s17, 128, %s756_s19, [#allocation12]  }
 0xa17   :  { %v725_v39 = vpop.f32.mrf.mxu2 }
 0xa18   :  { %v726_v40 = vadd.f32 %v824_v38, %v725_v39 }
 0xa1a   :  { %731 = vrot.lane.b32.xlu2 %v726_v40, %s1005_s2 }
 0xa74   :  { %v732_v41 = vpop.permute.xlu2 %731 }
 0xa75   :  { %735 = vst.msk [vmem:[#allocation10] sm:$0xff] %vm734_vm0, %v732_v41 }
 0xa76   :  { %747 = dma.vmem_to_hbm [thread:$0]  %s743_s4, 128, %s745_s0, [#allocation4]  }
 0xa77   :  { %993 = dma.done.wait [#allocation4], 128  }
 0xa78   :  { %994 = vsyncadd [#allocation4], 4294967168 }
 0xa79   :  { %995 = dma.done.wait [#allocation12], 128  }
 0xa7a   :  { %996 = vsyncadd [#allocation12], 4294967168 }
 0xa7b   :  { %767 = vsyncpa [#allocation3], 1 }
 0xa7c   :  { %768 = vsyncpa [#allocation6], 1 }
 0xa7d   :  { %769 = vsyncpa [#allocation9], 1 }
 0xa7e   :  { %770 = vsyncpa [#allocation4], 1 }
 0xa7f   :  { %771 = vsyncpa [#allocation12], 1 }

</bundles_post_ra>
